<compile_context>
chip_gen: v6e
topology: v6e:2x2x1
jax: 0.10.0
libtpu: 0.0.40
codegen_flags: <defaults>
</compile_context>

<pallas_src>
import jax
import jax.numpy as jnp
from jax import lax
from jax.experimental import pallas as pl
from jax.experimental.pallas import tpu as pltpu

_LANE = 128


# --------------------------------------------------------------------------
# Tiling helpers
# --------------------------------------------------------------------------
def _tpu_vmem_capacity_bytes():
    """Physical VMEM per core; conservative fallback if the query fails."""
    try:
        info = pltpu.get_tpu_info()
        cap = int(getattr(info, "vmem_capacity_bytes", 0) or 0)
        if cap > 0:
            return cap
    except Exception:
        pass
    return 64 * 1024 * 1024          # v7x per-TC (smallest current generation)


def _vmem_footprint_bytes(tn, H, W, n_tensor_streams):
    """Estimated VMEM use for one grid step at batch tile tn (f32)."""
    Ho, Wo = H - 2, W - 2
    per_lane_io = 4 * (H * W + (n_tensor_streams - 1) * Ho * Wo)
    pipeline = 2 * tn * per_lane_io                    # double-buffered tiles
    # in-kernel temps: one shifted x column view + acc + one elementwise temp
    temps = tn * 4 * (H * Wo + 2 * Ho * Wo)
    return pipeline + temps


def _pick_batch_tile(N, H, W, n_tensor_streams):
    """Returns (tn, n_pad, vmem_limit_bytes).

    tn is a multiple of 128 dividing n_pad (padding waste < 128 images),
    chosen as large as the generation-aware VMEM budget allows, and capped
    at n_pad//2 when n_pad >= 256 so there are always >= 2 grid steps
    (both TensorCores used on v7x)."""
    n_pad = ((N + _LANE - 1) // _LANE) * _LANE

    vmem_cap = _tpu_vmem_capacity_bytes()
    vmem_limit = min(vmem_cap * 3 // 4, 96 * 1024 * 1024)   # 48 MiB on v7x, 96 MiB on v5e/v6e
    budget = int(vmem_limit * 0.85)

    if _vmem_footprint_bytes(_LANE, H, W, n_tensor_streams) > budget:
        # TODO(synk): add H (row) tiling with a 2-row halo so large spatial
        # sizes fit VMEM; current layout needs a full (H, W, 128) slab.
        raise ValueError(
            f"image {H}x{W} too large for a single (H, W, 128) VMEM slab "
            f"(budget {budget} B); H-halo tiling not implemented")

    tn_cap = 2048
    tn_cap = min(tn_cap, n_pad)
    if n_pad >= 2 * _LANE:
        tn_cap = min(tn_cap, n_pad // 2)      # guarantee grid >= 2

    tn = _LANE
    cand = _LANE
    while cand <= tn_cap:
        if n_pad % cand == 0 and _vmem_footprint_bytes(cand, H, W, n_tensor_streams) <= budget:
            tn = cand
        cand += _LANE
    return tn, n_pad, vmem_limit


# --------------------------------------------------------------------------
# Kernel
# --------------------------------------------------------------------------
def _make_kernel(H, W, TN, y_mode, bg_mode, activation):
    """y_mode / bg_mode in {"none", "scalar", "tensor"}."""
    Ho, Wo = H - 2, W - 2

    def kernel(*refs):
        w_ref = refs[0]                      # (9,) f32 SMEM: 3x3 taps row-major
        s_ref = refs[1]                      # (5,) f32 SMEM: [bias, alpha, gamma, y_scalar, bg_scalar]
        i = 2
        x_ref = refs[i]; i += 1              # (H, W, TN) VMEM
        y_ref = None
        if y_mode == "tensor":
            y_ref = refs[i]; i += 1          # (Ho, Wo, TN)
        bg_ref = None
        if bg_mode == "tensor":
            bg_ref = refs[i]; i += 1         # (Ho, Wo, TN)
        o_ref = refs[i]                      # (Ho, Wo, TN)

        # Hoist all scalar reads out of the tap loop.
        w = [w_ref[k] for k in range(9)]
        bias = s_ref[0]
        alpha = s_ref[1]
        gamma = s_ref[2]

        # Bias-initialized accumulator (saves a separate "+ bias" VALU pass).
        acc = jnp.full((Ho, Wo, TN), bias, jnp.float32)
        # One sublane-shifted column view of x live at a time; the three row
        # shifts per column are free slices along the leading H axis.
        for dj in range(3):
            col = x_ref[:, dj:dj + Wo, :]                # (H, Wo, TN)
            for di in range(3):
                acc = acc + w[3 * di + dj] * col[di:di + Ho]

        # x = x.add(y, alpha=alpha)
        if y_mode == "tensor":
            acc = acc + alpha * y_ref[...]
        elif y_mode == "scalar":
            acc = acc + alpha * s_ref[3]

        # activation (torch.nn.Identity when None)
        if activation is not None:
            acc = activation(acc)

        # x = x.add(beta_gamma[0], alpha=beta_gamma[1])
        if bg_mode == "tensor":
            acc = acc + gamma * bg_ref[...]
        elif bg_mode == "scalar":
            acc = acc + gamma * s_ref[4]

        o_ref[...] = acc.astype(o_ref.dtype)

    return kernel


# --------------------------------------------------------------------------
# Wrapper
# --------------------------------------------------------------------------
def _operand_mode(a):
    if a is None:
        return "none"
    if jnp.ndim(a) == 0 or all(int(d) == 1 for d in jnp.shape(a)):
        return "scalar"
    return "tensor"


def _to_lane_major(a, N, Ho, Wo, n_pad):
    """broadcastable-to-(N,1,Ho,Wo) -> (Ho, Wo, n_pad) f32 (batch on lanes)."""
    a = jnp.asarray(a, jnp.float32)
    # TODO(synk): partial broadcasts (e.g. (1,1,Ho,Wo)) are materialized to the
    # full (Ho,Wo,N) slab; a row/column SMEM path would remove that HBM stream.
    a = jnp.broadcast_to(a, (N, 1, Ho, Wo)).reshape(N, Ho, Wo)
    a = jnp.transpose(a, (1, 2, 0))
    if n_pad != N:
        a = jnp.pad(a, ((0, 0), (0, 0), (0, n_pad - N)))
    return a


def conv_bias_add_activation(x, weight, bias=None, y=None, alpha=1.0,
                             beta_gamma=None, activation=None):
    """Forward of ConvBiasAddActivation.

    x:      (N, 1, H, W)  NCHW float32
    weight: (1, 1, 3, 3)  OIHW float32
    bias:   (1,) or None
    y:      optional, scalar or broadcastable to (N, 1, H-2, W-2)
    beta_gamma: optional (beta_tensor_or_scalar, gamma_scalar)
    activation: optional elementwise callable (None == Identity)
    Returns (N, 1, H-2, W-2) float32.
    """
    N, C, H, W = x.shape
    assert C == 1, "module is Conv2d(1, 1, 3)"
    assert H >= 3 and W >= 3, "valid 3x3 conv needs H >= 3 and W >= 3"
    Ho, Wo = H - 2, W - 2

    y_mode = _operand_mode(y)
    bg_operand = beta_gamma[0] if beta_gamma is not None else None
    bg_mode = _operand_mode(bg_operand)
    n_tensor_streams = 2 + (y_mode == "tensor") + (bg_mode == "tensor")

    tn, n_pad, vmem_limit = _pick_batch_tile(N, H, W, n_tensor_streams)
    grid = (n_pad // tn,)

    # ---- layout plumbing: batch onto the lane axis -------------------------
    x_lm = jnp.transpose(x.reshape(N, H, W).astype(jnp.float32), (1, 2, 0))
    if n_pad != N:
        x_lm = jnp.pad(x_lm, ((0, 0), (0, 0), (0, n_pad - N)))

    w_flat = jnp.asarray(weight, jnp.float32).reshape(9)
    bias_s = (jnp.asarray(bias, jnp.float32).reshape(())
              if bias is not None else jnp.float32(0.0))
    alpha_s = jnp.asarray(alpha, jnp.float32).reshape(())
    gamma_s = (jnp.asarray(beta_gamma[1], jnp.float32).reshape(())
               if beta_gamma is not None else jnp.float32(0.0))
    y_s = (jnp.asarray(y, jnp.float32).reshape(())
           if y_mode == "scalar" else jnp.float32(0.0))
    bg_s = (jnp.asarray(bg_operand, jnp.float32).reshape(())
            if bg_mode == "scalar" else jnp.float32(0.0))
    scal = jnp.stack([bias_s, alpha_s, gamma_s, y_s, bg_s])

    inputs = [w_flat, scal, x_lm]
    in_specs = [
        pl.BlockSpec(memory_space=pltpu.MemorySpace.SMEM),   # 3x3 taps
        pl.BlockSpec(memory_space=pltpu.MemorySpace.SMEM),   # scalars
        pl.BlockSpec((H, W, tn), lambda n: (0, 0, n)),       # x tile
    ]
    if y_mode == "tensor":
        inputs.append(_to_lane_major(y, N, Ho, Wo, n_pad))
        in_specs.append(pl.BlockSpec((Ho, Wo, tn), lambda n: (0, 0, n)))
    if bg_mode == "tensor":
        inputs.append(_to_lane_major(bg_operand, N, Ho, Wo, n_pad))
        in_specs.append(pl.BlockSpec((Ho, Wo, tn), lambda n: (0, 0, n)))

    kernel = _make_kernel(H, W, tn, y_mode, bg_mode, activation)

    out = pl.pallas_call(
        kernel,
        out_shape=jax.ShapeDtypeStruct((Ho, Wo, n_pad), jnp.float32),
        grid=grid,
        in_specs=in_specs,
        out_specs=pl.BlockSpec((Ho, Wo, tn), lambda n: (0, 0, n)),
        compiler_params=pltpu.CompilerParams(
            dimension_semantics=("parallel",),
            vmem_limit_bytes=vmem_limit),
    )(*inputs)

    # back to NCHW, dropping the lane padding
    out = jnp.transpose(out[:, :, :N], (2, 0, 1)).reshape(N, 1, Ho, Wo)

    # TODO(synk): the torch.Generator() in the PyTorch return tuple has no
    # JAX / Pallas equivalent; only the tensor result is returned.
    return out


# --------------------------------------------------------------------------
# Self-test
# --------------------------------------------------------------------------
if __name__ == "__main__":
    key = jax.random.PRNGKey(0)
    k_x, k_w, k_b, k_y, k_beta, k_x2 = jax.random.split(key, 6)

    # Batch large enough to fill 128-lane tiles and give >= 2 grid steps
    # (total x is still only 256 KiB).
    N, C, H, W = 256, 1, 16, 16
    Ho, Wo = H - 2, W - 2

    x = jax.random.normal(k_x, (N, C, H, W), jnp.float32)
    weight = jax.random.normal(k_w, (1, 1, 3, 3), jnp.float32) * 0.2
    bias = jax.random.normal(k_b, (1,), jnp.float32) * 0.1
    y = jax.random.normal(k_y, (N, C, Ho, Wo), jnp.float32)
    beta = jax.random.normal(k_beta, (N, C, Ho, Wo), jnp.float32)
    alpha, gamma = 0.5, 2.0

    def conv_ref(a):
        return lax.conv(a, weight, (1, 1), "VALID") + bias.reshape(1, 1, 1, 1)

    relu = lambda t: jnp.maximum(t, 0.0)

    # 1) Identity activation + tensor y + tensor beta.
    out1 = jax.block_until_ready(conv_bias_add_activation(
        x, weight, bias, y=y, alpha=alpha, beta_gamma=(beta, gamma),
        activation=None))
    ref1 = conv_ref(x) + alpha * y + gamma * beta
    assert out1.shape == (N, 1, Ho, Wo)
    err1 = jnp.max(jnp.abs(out1 - ref1))
    assert jnp.allclose(out1, ref1, atol=1e-4, rtol=1e-5), f"max abs err {err1}"

    # 2) ReLU activation: ordering is conv -> +alpha*y -> act -> +gamma*beta.
    out2 = jax.block_until_ready(conv_bias_add_activation(
        x, weight, bias, y=y, alpha=alpha, beta_gamma=(beta, gamma),
        activation=relu))
    ref2 = relu(conv_ref(x) + alpha * y) + gamma * beta
    err2 = jnp.max(jnp.abs(out2 - ref2))
    assert jnp.allclose(out2, ref2, atol=1e-4, rtol=1e-5), f"max abs err {err2}"

    # 3) Ragged small batch (N=5), no bias, scalar y / scalar beta through the
    #    SMEM broadcast path, ReLU activation.
    x3 = jax.random.normal(k_x2, (5, 1, H, W), jnp.float32)
    out3 = jax.block_until_ready(conv_bias_add_activation(
        x3, weight, None, y=0.75, alpha=alpha,
        beta_gamma=(jnp.float32(-1.25), gamma), activation=relu))
    ref3 = relu(lax.conv(x3, weight, (1, 1), "VALID") + alpha * 0.75) + gamma * (-1.25)
    err3 = jnp.max(jnp.abs(out3 - ref3))
    assert out3.shape == (5, 1, Ho, Wo)
    assert jnp.allclose(out3, ref3, atol=1e-4, rtol=1e-5), f"max abs err {err3}"

    print("KERNEL_OK")
</pallas_src>

<mosaic_0001>
module attributes {stable_mosaic.version = 11 : i64} {
  func.func @kernel(%arg0: i32, %arg1: memref<9xf32, #tpu.memory_space<smem>>, %arg2: memref<5xf32, #tpu.memory_space<smem>>, %arg3: memref<16x16x128xf32, #tpu.memory_space<vmem>>, %arg4: memref<14x14x128xf32, #tpu.memory_space<vmem>>, %arg5: memref<14x14x128xf32, #tpu.memory_space<vmem>>, %arg6: memref<14x14x128xf32, #tpu.memory_space<vmem>>) attributes {dimension_semantics = [#tpu.dimension_semantics<parallel>], iteration_bounds = array<i64: 2>, scalar_prefetch = 0 : i64, scratch_operands = 0 : i64, tpu.core_type = #tpu.core_type<tc>, window_params = [{transform_indices = @transform_0, window_bounds = array<i64: 9>}, {transform_indices = @transform_1, window_bounds = array<i64: 5>}, {transform_indices = @transform_2, window_bounds = array<i64: 16, 16, 128>}, {transform_indices = @transform_3, window_bounds = array<i64: 14, 14, 128>}, {transform_indices = @transform_4, window_bounds = array<i64: 14, 14, 128>}, {transform_indices = @transform_5, window_bounds = array<i64: 14, 14, 128>}]} {
    %c0 = arith.constant 0 : index
    %0 = memref.load %arg1[%c0] : memref<9xf32, #tpu.memory_space<smem>>
    %c1 = arith.constant 1 : index
    %1 = memref.load %arg1[%c1] : memref<9xf32, #tpu.memory_space<smem>>
    %c2 = arith.constant 2 : index
    %2 = memref.load %arg1[%c2] : memref<9xf32, #tpu.memory_space<smem>>
    %c3 = arith.constant 3 : index
    %3 = memref.load %arg1[%c3] : memref<9xf32, #tpu.memory_space<smem>>
    %c4 = arith.constant 4 : index
    %4 = memref.load %arg1[%c4] : memref<9xf32, #tpu.memory_space<smem>>
    %c5 = arith.constant 5 : index
    %5 = memref.load %arg1[%c5] : memref<9xf32, #tpu.memory_space<smem>>
    %c6 = arith.constant 6 : index
    %6 = memref.load %arg1[%c6] : memref<9xf32, #tpu.memory_space<smem>>
    %c7 = arith.constant 7 : index
    %7 = memref.load %arg1[%c7] : memref<9xf32, #tpu.memory_space<smem>>
    %c8 = arith.constant 8 : index
    %8 = memref.load %arg1[%c8] : memref<9xf32, #tpu.memory_space<smem>>
    %c0_0 = arith.constant 0 : index
    %9 = memref.load %arg2[%c0_0] : memref<5xf32, #tpu.memory_space<smem>>
    %c1_1 = arith.constant 1 : index
    %10 = memref.load %arg2[%c1_1] : memref<5xf32, #tpu.memory_space<smem>>
    %c2_2 = arith.constant 2 : index
    %11 = memref.load %arg2[%c2_2] : memref<5xf32, #tpu.memory_space<smem>>
    %12 = vector.broadcast %9 : f32 to vector<14x14x128xf32>
    %c0_3 = arith.constant 0 : index
    %c0_4 = arith.constant 0 : index
    %c0_5 = arith.constant 0 : index
    %13 = vector.load %arg3[%c0_3, %c0_4, %c0_5] : memref<16x16x128xf32, #tpu.memory_space<vmem>>, vector<16x14x128xf32>
    %14 = vector.extract_strided_slice %13 {offsets = [0, 0, 0], sizes = [14, 14, 128], strides = [1, 1, 1]} : vector<16x14x128xf32> to vector<14x14x128xf32>
    %15 = vector.broadcast %0 : f32 to vector<14x14x128xf32>
    %16 = arith.mulf %15, %14 : vector<14x14x128xf32>
    %17 = arith.addf %12, %16 : vector<14x14x128xf32>
    %18 = vector.extract_strided_slice %13 {offsets = [1, 0, 0], sizes = [14, 14, 128], strides = [1, 1, 1]} : vector<16x14x128xf32> to vector<14x14x128xf32>
    %19 = vector.broadcast %3 : f32 to vector<14x14x128xf32>
    %20 = arith.mulf %19, %18 : vector<14x14x128xf32>
    %21 = arith.addf %17, %20 : vector<14x14x128xf32>
    %22 = vector.extract_strided_slice %13 {offsets = [2, 0, 0], sizes = [14, 14, 128], strides = [1, 1, 1]} : vector<16x14x128xf32> to vector<14x14x128xf32>
    %23 = vector.broadcast %6 : f32 to vector<14x14x128xf32>
    %24 = arith.mulf %23, %22 : vector<14x14x128xf32>
    %25 = arith.addf %21, %24 : vector<14x14x128xf32>
    %c0_6 = arith.constant 0 : index
    %c1_7 = arith.constant 1 : index
    %c0_8 = arith.constant 0 : index
    %26 = vector.load %arg3[%c0_6, %c1_7, %c0_8] : memref<16x16x128xf32, #tpu.memory_space<vmem>>, vector<16x14x128xf32>
    %27 = vector.extract_strided_slice %26 {offsets = [0, 0, 0], sizes = [14, 14, 128], strides = [1, 1, 1]} : vector<16x14x128xf32> to vector<14x14x128xf32>
    %28 = vector.broadcast %1 : f32 to vector<14x14x128xf32>
    %29 = arith.mulf %28, %27 : vector<14x14x128xf32>
    %30 = arith.addf %25, %29 : vector<14x14x128xf32>
    %31 = vector.extract_strided_slice %26 {offsets = [1, 0, 0], sizes = [14, 14, 128], strides = [1, 1, 1]} : vector<16x14x128xf32> to vector<14x14x128xf32>
    %32 = vector.broadcast %4 : f32 to vector<14x14x128xf32>
    %33 = arith.mulf %32, %31 : vector<14x14x128xf32>
    %34 = arith.addf %30, %33 : vector<14x14x128xf32>
    %35 = vector.extract_strided_slice %26 {offsets = [2, 0, 0], sizes = [14, 14, 128], strides = [1, 1, 1]} : vector<16x14x128xf32> to vector<14x14x128xf32>
    %36 = vector.broadcast %7 : f32 to vector<14x14x128xf32>
    %37 = arith.mulf %36, %35 : vector<14x14x128xf32>
    %38 = arith.addf %34, %37 : vector<14x14x128xf32>
    %c0_9 = arith.constant 0 : index
    %c2_10 = arith.constant 2 : index
    %c0_11 = arith.constant 0 : index
    %39 = vector.load %arg3[%c0_9, %c2_10, %c0_11] : memref<16x16x128xf32, #tpu.memory_space<vmem>>, vector<16x14x128xf32>
    %40 = vector.extract_strided_slice %39 {offsets = [0, 0, 0], sizes = [14, 14, 128], strides = [1, 1, 1]} : vector<16x14x128xf32> to vector<14x14x128xf32>
    %41 = vector.broadcast %2 : f32 to vector<14x14x128xf32>
    %42 = arith.mulf %41, %40 : vector<14x14x128xf32>
    %43 = arith.addf %38, %42 : vector<14x14x128xf32>
    %44 = vector.extract_strided_slice %39 {offsets = [1, 0, 0], sizes = [14, 14, 128], strides = [1, 1, 1]} : vector<16x14x128xf32> to vector<14x14x128xf32>
    %45 = vector.broadcast %5 : f32 to vector<14x14x128xf32>
    %46 = arith.mulf %45, %44 : vector<14x14x128xf32>
    %47 = arith.addf %43, %46 : vector<14x14x128xf32>
    %48 = vector.extract_strided_slice %39 {offsets = [2, 0, 0], sizes = [14, 14, 128], strides = [1, 1, 1]} : vector<16x14x128xf32> to vector<14x14x128xf32>
    %49 = vector.broadcast %8 : f32 to vector<14x14x128xf32>
    %50 = arith.mulf %49, %48 : vector<14x14x128xf32>
    %51 = arith.addf %47, %50 : vector<14x14x128xf32>
    %c0_12 = arith.constant 0 : index
    %c0_13 = arith.constant 0 : index
    %c0_14 = arith.constant 0 : index
    %52 = vector.load %arg4[%c0_12, %c0_13, %c0_14] : memref<14x14x128xf32, #tpu.memory_space<vmem>>, vector<14x14x128xf32>
    %53 = vector.broadcast %10 : f32 to vector<14x14x128xf32>
    %54 = arith.mulf %53, %52 : vector<14x14x128xf32>
    %55 = arith.addf %51, %54 : vector<14x14x128xf32>
    %c0_15 = arith.constant 0 : index
    %c0_16 = arith.constant 0 : index
    %c0_17 = arith.constant 0 : index
    %56 = vector.load %arg5[%c0_15, %c0_16, %c0_17] : memref<14x14x128xf32, #tpu.memory_space<vmem>>, vector<14x14x128xf32>
    %57 = vector.broadcast %11 : f32 to vector<14x14x128xf32>
    %58 = arith.mulf %57, %56 : vector<14x14x128xf32>
    %59 = arith.addf %55, %58 : vector<14x14x128xf32>
    %c0_18 = arith.constant 0 : index
    %c0_19 = arith.constant 0 : index
    %c0_20 = arith.constant 0 : index
    %60 = vector.load %arg6[%c0_18, %c0_19, %c0_20] : memref<14x14x128xf32, #tpu.memory_space<vmem>>, vector<14x14x128xf32>
    tpu.vector_store %arg6[%c0_18, %c0_19, %c0_20], %59 {strides = array<i32>} : memref<14x14x128xf32, #tpu.memory_space<vmem>>, vector<14x14x128xf32>,
    return
  }
  func.func @transform_0(%arg0: i32) -> i32 {
    %c0_i32 = arith.constant 0 : i32
    %c0_i32_0 = arith.constant 0 : i32
    return %c0_i32 : i32
  }
  func.func @transform_1(%arg0: i32) -> i32 {
    %c0_i32 = arith.constant 0 : i32
    %c0_i32_0 = arith.constant 0 : i32
    return %c0_i32 : i32
  }
  func.func @transform_2(%arg0: i32) -> (i32, i32, i32) {
    %c0_i32 = arith.constant 0 : i32
    %c0_i32_0 = arith.constant 0 : i32
    %c0_i32_1 = arith.constant 0 : i32
    return %c0_i32, %c0_i32_0, %arg0 : i32, i32, i32
  }
  func.func @transform_3(%arg0: i32) -> (i32, i32, i32) {
    %c0_i32 = arith.constant 0 : i32
    %c0_i32_0 = arith.constant 0 : i32
    %c0_i32_1 = arith.constant 0 : i32
    return %c0_i32, %c0_i32_0, %arg0 : i32, i32, i32
  }
  func.func @transform_4(%arg0: i32) -> (i32, i32, i32) {
    %c0_i32 = arith.constant 0 : i32
    %c0_i32_0 = arith.constant 0 : i32
    %c0_i32_1 = arith.constant 0 : i32
    return %c0_i32, %c0_i32_0, %arg0 : i32, i32, i32
  }
  func.func @transform_5(%arg0: i32) -> (i32, i32, i32) {
    %c0_i32 = arith.constant 0 : i32
    %c0_i32_0 = arith.constant 0 : i32
    %c0_i32_1 = arith.constant 0 : i32
    return %c0_i32, %c0_i32_0, %arg0 : i32, i32, i32
  }
}

</mosaic_0001>

<bundles_post_ra>
// kernel: tpu_custom_call.1
= control target key start
LH: loop header
LB: loop body
LE: loop exit
PB: predicated region body
PF: predicated region fallthrough
CT: control target
= control target key end

     0   :  { %s2928_s0 = inlined_call_operand.hbm [shape: f32[9], index: 0, kind: input, shape index: {}]   ;;  %s2929_s1 = inlined_call_operand.vmem [shape: f32[5], index: 1, kind: input, shape index: {}]   ;;  %s2930_s2 = inlined_call_operand.hbm [shape: f32[16,16,256], index: 2, kind: input, shape index: {}]   ;;  %s2931_s3 = inlined_call_operand.hbm [shape: f32[14,14,256], index: 3, kind: input, shape index: {}]   ;;  %s2932_s4 = inlined_call_operand.hbm [shape: f32[14,14,256], index: 4, kind: input, shape index: {}]   ;;  %s2933_s5 = inlined_call_operand.hbm [shape: f32[14,14,256], index: 5, kind: output, shape index: {}]  }
   0x1   :  { %2947 = sst [smem:[#allocation20_spill]] %s2928_s0 }
   0x2   :  { %2948 = sst [smem:[#allocation21_spill]] %s2929_s1 }
   0x3   :  { %2949 = sst [smem:[#allocation22_spill]] %s2930_s2 }
   0x4   :  { %2950 = sst [smem:[#allocation23_spill]] %s2931_s3 }
   0x5   :  { %10 = vsyncpa [#allocation5], 0 }
   0x6   :  { %11 = vsyncpa [#allocation6], 0 }
   0x7   :  { %12 = vsyncpa [#allocation3], 0 }
   0x8   :  { %14 = vsyncpa [#allocation3 + $0x1], 0 }
   0x9   :  { %15 = vsyncpa [#allocation10], 0 }
   0xa   :  { %17 = vsyncpa [#allocation10 + $0x1], 0 }
   0xb   :  { %18 = vsyncpa [#allocation4], 0 }
   0xc   :  { %20 = vsyncpa [#allocation4 + $0x1], 0  ;;  %s1657_s18 = smov 0   ;;  %s1659_s19 = smov 0  }
   0xd   :  { %s1661_s20 = smov 0   ;;  %s1663_s21 = smov 0  }
   0xe LB: > { %2951 = sst [smem:[#allocation18_spill]] %s1609_s20  ;;  %s1678_s22 = sadd.s32 1, %s1613_s21   ;;  %s1613_s21 = sphi %s1663_s21, %s2984_s21   ;;  %s1609_s20 = sphi %s1661_s20, %s2981_s20   ;;  %s1605_s19 = sphi %s1659_s19, %s2983_s19   ;;  %s1601_s18 = sphi %s1657_s18, %s2982_s18  }
   0xf   : > { %s75_s23 = sadd.s32 1, %s1609_s20  ;;  %s72_s24 = ssub.s32 %s1613_s21, %s1678_s22 }
  0x10   : > { %p2934_p0 = scmp.ne.s32.totalorder %s1609_s20, %s1605_s19  ;;  %p73_p1 = scmp.eq.s32.totalorder %s72_s24, 0 }
  0x11   : > { %p83_p2 = scmp.eq.s32.totalorder %s1613_s21, 0  ;;  %p1383_p4 = scmp.lt.s32.totalorder %s1613_s21, 2 }
  0x12   : > { %s1689_s25 = scalar_select %p73_p1, %s1609_s20, %s75_s23  }
  0x13   : > { %p84_p5 = por %p83_p2, %p2934_p0  ;;  %s1695_s26 = sand.u32 1, %s1609_s20  }
  0x14   : > { %2952 = sst [smem:[#allocation19_spill]] %s1689_s25  ;;  %s1698_s27 = sshll.u32 %s1613_s21, 7 }
  0x15   : > { %p1700_p6 = pnand %p1383_p4, %p84_p5  ;;  %s230_s29 = sand.u32 1, %s1613_s21  }
  0x16   : > { %s2935_s30 = smul.u32 224, %s1695_s26  ;;  %s2954_s3 = sld [smem:[#allocation23_spill]] }
  0x17   : > { %s1713_s9 = sadd.s32 4294967295, %s1613_s21   ;;  %s1315_s12 = sadd.s32 4294967294, %s1613_s21  }
  0x18   : > { %s234_s10 = scalar_lea.vmem [#allocation9], %s2935_s30  ;;  %s1722_s13 = scalar_lea.sflag [#allocation10], %s230_s29 }
  0x19   : > { %s240_s11 = sshll.u32 %s234_s10, 4  ;;  %p1728_p9 = pneg %p1700_p6  ;;  %s1718_s11 = int_to_ptr.vmem [resolvable:$true] %s240_s11 }
  0x1c   : > { %s1710_s8 = scalar_lea.hbm %s2954_s3, %s1698_s27  ;;  %s1432_s23 = scalar_lea.hbm %s2954_s3, 7168 }
  0x1d   : > { %s1427_s14 = scalar_lea.hbm %s1710_s8, 3584  ;;  %p1433_p12 = scmp.lt.s32.totalorder %s1710_s8, %s2954_s3 }
  0x1e   : > { %p1428_p8 = scmp.ne.s32.totalorder %s1710_s8, %s1427_s14  ;;  %p1434_p13 = scmp.lt.s32.totalorder %s1432_s23, %s1427_s14 }
  0x20   : > { %p1430_p10 = pnand %p1728_p9, %p1428_p8  ;;  %p1435_p1 = por %p1434_p13, %p1433_p12 }
  0x22   : > { %p1431_p11 = pneg %p1430_p10 }
  0x24   : > { %p1436_p2 = pnand %p1435_p1, %p1431_p11 }
  0x26   : > { %1439 = shalt.err (!%p1436_p2)
}
  0x27   : > { %s1440_s29 = scalar_lea.vmem %s1718_s11, 3584  ;;  %s1615_s7 = smov [#allocation9]  }
  0x28   : > { %p1441_p4 = scmp.ne.s32.totalorder %s1718_s11, %s1440_s29  ;;  %s1445_s10 = sshll.u32 %s1615_s7, 4  ;;  %s1446_s10 = int_to_ptr.vmem [resolvable:$false] %s1445_s10 }
  0x29   : > { %s1447_s16 = scalar_lea.vmem %s1446_s10, 7168  ;;  %p1448_p10 = scmp.lt.s32.totalorder %s1718_s11, %s1446_s10 }
  0x2a   : > { %p1443_p5 = pnand %p1441_p4, %p1728_p9  ;;  %p1449_p3 = scmp.lt.s32.totalorder %s1447_s16, %s1440_s29 }
  0x2c   : > { %p1444_p8 = pneg %p1443_p5  ;;  %p1450_p0 = por %p1449_p3, %p1448_p10 }
  0x2e   : > { %p1451_p7 = pnand %p1450_p0, %p1444_p8 }
  0x30   : > { %1454 = shalt.err (!%p1451_p7)
}
  0x31   : > { %s2936_s14 = smov 256   ;;  %s2938_s17 = smov 128  }
  0x32   : > { %s2940_s23 = smov 8   ;;  %p2942_p0 = scmp.eq.s32.totalorder %s1713_s9, 0 }
  0x33   : > { %1373 = dma.hbm_to_vmem [thread:$0]  (!%p1700_p6), %s1710_s8, 3584, %s1718_s11, %s1722_s13, %s2936_s14, %s2938_s17, %s2940_s23  }
  0x34   : > { %p164_p3 = scmp.eq.s32.totalorder %s1713_s9, 1  ;;  %p170_p7 = scmp.eq.s32.totalorder %s1315_s12, 1 }
  0x35   : > { %p1316_p11 = scmp.ge.s32.totalorder %s1613_s21, 1  ;;  %p2956_p12 = scmp.ne.s32.totalorder %s1605_s19, %s1601_s18 }
  0x36   : > { %p2958_p1 = scmp.ne.s32.totalorder %s1609_s20, %s1605_s19  ;;  %p177_p8 = scmp.lt.s32.totalorder %s1613_s21, 3 }
  0x37   : > { %p1764_p13 = por %p2942_p0, %p2956_p12  ;;  %p2960_p4 = pmov %p2956_p12 }
  0x38   : > { %p1771_p2 = por %p164_p3, %p2958_p1  ;;  %p1783_p10 = pnand %p1316_p11, %p177_p8 }
  0x39   : > { %s2957_s24 = scalar_select %p1764_p13, 1, 0 }
  0x3a   : > { %s2959_s6 = scalar_select %p1771_p2, 1, 0 }
  0x3b   : > { %p1778_p5 = por %p170_p7, %p2960_p4  ;;  %s2963_s1 = sld [smem:[#allocation21_spill]] }
  0x3c   : > { %s2962_s8 = scalar_select %p1783_p10, 1, 0 }
  0x3d   : > { %s2961_s29 = scalar_select %p1778_p5, 1, 0 }
  0x3e   : > { %p1360_p3 = pneg %p1783_p10  ;;  %s1320_s10 = sshll.u32 %s1695_s26, 8 }
  0x3f   : > { %s2964_s2 = sld [smem:[#allocation22_spill]]  ;;  %s214_s23 = scalar_lea.vmem [#allocation8], %s1320_s10 }
  0x40   : > { %p1801_p7 = pnand %p1360_p3, %p2942_p0  ;;  %s220_s11 = sshll.u32 %s214_s23, 4  ;;  %s1805_s11 = int_to_ptr.vmem [resolvable:$true] %s220_s11 }
  0x41   : > { %s199_s7 = sshll.u32 %s2963_s1, 4  ;;  %s1619_s12 = smov [#allocation2]   ;;  %s200_s7 = int_to_ptr.vmem [resolvable:$true] %s199_s7 }
  0x42   : > { %s2966_s0 = sld [smem:[#allocation20_spill]]  ;;  %s1466_s30 = scalar_lea.vmem %s200_s7, 16 }
  0x43   : > { %p1467_p11 = scmp.ne.s32.totalorder %s200_s7, %s1466_s30  ;;  %p1468_p12 = pneg %p1801_p7 }
  0x44   : > { %p1474_p8 = scmp.lt.s32.totalorder %s200_s7, %s200_s7  ;;  %p1475_p3 = scmp.lt.s32.totalorder %s1466_s30, %s1466_s30 }
  0x45   : > { %s1797_s14 = scalar_lea.hbm %s2964_s2, %s1698_s27  ;;  %p1469_p1 = pnand %p1468_p12, %p1467_p11 }
  0x46   : > { %p1476_p0 = por %p1475_p3, %p1474_p8 }
  0x47   : > { %p1470_p4 = pneg %p1469_p1 }
  0x48   : > { %1363 = dma.hbm_to_smem (!%p1801_p7), %s2966_s0, 16, %s1619_s12, [#allocation5]  }
  0x49   : > { %p1477_p5 = pnand %p1476_p0, %p1470_p4 }
  0x4b   : > { %1480 = shalt.err (!%p1477_p5)
}
  0x4c   : > { %s1620_s23 = smov [#allocation7]   ;;  %s211_s1 = scalar_lea.sflag [#allocation3], %s1695_s26 }
  0x4d   : > { %1366 = dma.vmem_to_smem (!%p1801_p7), %s200_s7, 16, %s1620_s23, [#allocation6]  }
  0x4e   : > { %s1481_s3 = scalar_lea.hbm %s1797_s14, 4096  ;;  %s1486_s12 = scalar_lea.hbm %s2964_s2, 8192 }
  0x4f   : > { %p1482_p2 = scmp.ne.s32.totalorder %s1797_s14, %s1481_s3  ;;  %p1487_p0 = scmp.lt.s32.totalorder %s1797_s14, %s2964_s2 }
  0x50   : > { %p1488_p5 = scmp.lt.s32.totalorder %s1486_s12, %s1481_s3 }
  0x51   : > { %p1484_p11 = pnand %p1482_p2, %p1728_p9 }
  0x52   : > { %p1489_p1 = por %p1488_p5, %p1487_p0 }
  0x53   : > { %p1485_p12 = pneg %p1484_p11 }
  0x55   : > { %p1490_p4 = pnand %p1489_p1, %p1485_p12 }
  0x57   : > { %1493 = shalt.err (!%p1490_p4)
}
  0x58   : > { %s1494_s17 = scalar_lea.vmem %s1805_s11, 4096  ;;  %s1621_s7 = smov [#allocation8]  }
  0x59   : > { %p1495_p7 = scmp.ne.s32.totalorder %s1805_s11, %s1494_s17  ;;  %s1499_s23 = sshll.u32 %s1621_s7, 4  ;;  %s1500_s23 = int_to_ptr.vmem [resolvable:$false] %s1499_s23 }
  0x5a   : > { %s1501_s10 = scalar_lea.vmem %s1500_s23, 8192  ;;  %p1502_p3 = scmp.lt.s32.totalorder %s1805_s11, %s1500_s23 }
  0x5b   : > { %p1497_p2 = pnand %p1495_p7, %p1728_p9  ;;  %p1503_p11 = scmp.lt.s32.totalorder %s1501_s10, %s1494_s17 }
  0x5d   : > { %p1498_p8 = pneg %p1497_p2  ;;  %p1504_p13 = por %p1503_p11, %p1502_p3 }
  0x5f   : > { %p1505_p10 = pnand %p1504_p13, %p1498_p8 }
  0x61   : > { %1508 = shalt.err (!%p1505_p10)
}
  0x62   : > { %s2967_s0 = smov 8   ;;  %s2968_s3 = smov 128  }
  0x63   : > { %s2969_s16 = smov 256   ;;  %s1844_s7 = scalar_lea.hbm %s2932_s4, %s1698_s27 }
  0x64   : > { %1370 = dma.hbm_to_vmem [thread:$0]  (!%p1700_p6), %s1797_s14, 4096, %s1805_s11, %s211_s1, %s2969_s16, %s2968_s3, %s2967_s0  }
  0x65   : > { %s2970_s17 = smul.u32 224, %s1695_s26  ;;  %s1509_s2 = scalar_lea.hbm %s1844_s7, 3584 }
  0x66   : > { %p1510_p13 = scmp.ne.s32.totalorder %s1844_s7, %s1509_s2  ;;  %s1514_s14 = scalar_lea.hbm %s2932_s4, 7168 }
  0x67   : > { %s254_s23 = scalar_lea.vmem [#allocation11], %s2970_s17  ;;  %p1515_p0 = scmp.lt.s32.totalorder %s1844_s7, %s2932_s4 }
  0x68   : > { %s260_s10 = sshll.u32 %s254_s23, 4  ;;  %p1512_p10 = pnand %p1510_p13, %p1728_p9  ;;  %s261_s10 = int_to_ptr.vmem [resolvable:$true] %s260_s10 }
  0x69   : > { %p1516_p5 = scmp.lt.s32.totalorder %s1514_s14, %s1509_s2 }
  0x6a   : > { %p1513_p12 = pneg %p1512_p10 }
  0x6b   : > { %p1517_p1 = por %p1516_p5, %p1515_p0 }
  0x6d   : > { %p1518_p4 = pnand %p1517_p1, %p1513_p12 }
  0x6f   : > { %1521 = shalt.err (!%p1518_p4)
}
  0x70   : > { %s1522_s26 = scalar_lea.vmem %s261_s10, 3584  ;;  %s1622_s27 = smov [#allocation11]  }
  0x71   : > { %p1523_p7 = scmp.ne.s32.totalorder %s261_s10, %s1522_s26  ;;  %s1527_s12 = sshll.u32 %s1622_s27, 4  ;;  %s1528_s12 = int_to_ptr.vmem [resolvable:$false] %s1527_s12 }
  0x72   : > { %s1529_s30 = scalar_lea.vmem %s1528_s12, 7168  ;;  %p1530_p3 = scmp.lt.s32.totalorder %s261_s10, %s1528_s12 }
  0x73   : > { %p1525_p2 = pnand %p1523_p7, %p1728_p9  ;;  %p1531_p11 = scmp.lt.s32.totalorder %s1529_s30, %s1522_s26 }
  0x75   : > { %p1526_p8 = pneg %p1525_p2  ;;  %p1532_p13 = por %p1531_p11, %p1530_p3 }
  0x77   : > { %p1533_p10 = pnand %p1532_p13, %p1526_p8 }
  0x79   : > { %1536 = shalt.err (!%p1533_p10)
}
  0x7a   : > { %1376 = dma.hbm_to_vmem [thread:$0]  (!%p1700_p6), %s1844_s7, 3584, %s261_s10, %s1722_s13, %s2969_s16, %s2968_s3, %s2967_s0  }
  0x7b   : > { %p2971_p9 = scmp.ne.s32.totalorder %s2962_s8, 0 }
  0x7c   : > { %p2972_p12 = scmp.eq.s32.totalorder (!%p2971_p9), %s1713_s9, 0 }
  0x7d   : > { %272 = sbr.rel (%p2971_p9) target bundleno = 335 (0x14f), region = 40 }
  0x82   : > { %1580 = dma.done.wait (%p2972_p12), [#allocation5], 16   ;;  %p2973_p0 = pmov %p2972_p12 }
  0x84   : > { %1582 = vsyncadd (%p2973_p0), [#allocation5], 4294967280  ;;  %p2974_p5 = pmov %p2973_p0 }
  0x85   : > { %p2975_p1 = pmov %p2973_p0 }
  0x86   : > { %1584 = dma.done.wait (%p2974_p5), [#allocation6], 16  }
  0x87   : > { %1586 = vsyncadd (%p2975_p1), [#allocation6], 4294967280  ;;  %s1879_s2 = sand.u32 1, %s1605_s19   ;;  %p2976_p6 = scmp.ne.s32.totalorder %s2957_s24, 0 }
  0x88   : > { %s1327_s20 = sshll.u32 %s1879_s2, 8  ;;  %s283_s25 = scalar_lea.sflag [#allocation3], %s1879_s2 }
  0x89   : > { %s1883_s28 = scalar_lea.vmem [#allocation8], %s1327_s20 }
  0x8a   : > { %1588 = dma.done.wait (%p2976_p6), %s283_s25, 4096  }
  0x8b   : > { %1590 = vsyncadd (%p2976_p6), %s283_s25, 4294963200  ;;  %s291_s13 = sand.u32 1, %s1713_s9   ;;  %s1891_s15 = smul.u32 224, %s1879_s2 }
  0x8c   : > { %s292_s8 = scalar_lea.sflag [#allocation10], %s291_s13 }
  0x8d   : > { %s1894_s0 = scalar_lea.vmem [#allocation9], %s1891_s15 }
  0x8e   : > { %1592 = dma.done.wait (%p2976_p6), %s292_s8, 7168  }
  0x8f   : > { %1594 = vsyncadd (%p2976_p6), %s292_s8, 4294960128  ;;  %s1901_s3 = scalar_lea.vmem [#allocation11], %s1891_s15 }
  0x90   : > { %309 = sfence }
  0x91   : > { %s342_s16 = sld [smem:[#allocation2]]  ;;  %v355_v0 = vld [vmem:[%s1883_s28] sm:$0xff]  ;;  %v357_v1 = vld [vmem:[%s1883_s28 + $0x10] sm:$0xff]  ;;  %v356_v4 = vld [vmem:[%s1883_s28 + $0x8] sm:$0x3f]  ;;  %s2163_s30 = scalar_lea.vmem [#allocation12], %s1891_s15 }
  0x92   : > { %s1328_s7 = sld [smem:[#allocation2 + $0x1]]  ;;  %v558_v3 = vld [vmem:[%s1883_s28 + $0x1] sm:$0xff]  ;;  %v560_v5 = vld [vmem:[%s1883_s28 + $0x11] sm:$0xff]  ;;  %v559_v8 = vld [vmem:[%s1883_s28 + $0x9] sm:$0x3f]  ;;  %s1338_s20 = sshll.u32 %s1713_s9, 7 }
  0x93   : > { %s1329_s17 = sld [smem:[#allocation2 + $0x2]]  ;;  %v761_v7 = vld [vmem:[%s1883_s28 + $0x2] sm:$0xff]  ;;  %v763_v10 = vld [vmem:[%s1883_s28 + $0x12] sm:$0xff]  ;;  %v762_v12 = vld [vmem:[%s1883_s28 + $0xa] sm:$0x3f]  ;;  %s1175_s25 = sshll.u32 %s2163_s30, 4  ;;  %s2884_s25 = int_to_ptr.vmem [resolvable:$true] %s1175_s25 }
  0x94   : > { %s1330_s23 = sld [smem:[#allocation2 + $0x3]]  ;;  %v1950_v21 = vld [vmem:[%s1883_s28 + $0x20] sm:$0xff]  ;;  %v358_v24 = vld [vmem:[%s1883_s28 + $0x18] sm:$0x3f]  ;;  %v1994_v41 = vld [vmem:[%s1883_s28 + $0x28] sm:$0x3f]  ;;  %s2882_s15 = scalar_lea.hbm %s2933_s5, %s1338_s20 }
  0x95   : > { %s1331_s10 = sld [smem:[#allocation2 + $0x4]]  ;;  %v1966_v28 = vld [vmem:[%s1883_s28 + $0x21] sm:$0xff]  ;;  %v561_v31 = vld [vmem:[%s1883_s28 + $0x19] sm:$0x3f]  ;;  %v2000_v43 = vld [vmem:[%s1883_s28 + $0x30] sm:$0xff]  ;;  %s1163_s8 = scalar_lea.sflag [#allocation4], %s1879_s2 }
  0x96   : > { %s1332_s14 = sld [smem:[#allocation2 + $0x5]]  ;;  %v1979_v34 = vld [vmem:[%s1883_s28 + $0x22] sm:$0xff]  ;;  %v764_v37 = vld [vmem:[%s1883_s28 + $0x1a] sm:$0x3f]  ;;  %v2025_v54 = vld [vmem:[%s1883_s28 + $0x2a] sm:$0x3f] }
  0x97   : > { %s1904_s24 = sld [smem:[#allocation2 + $0x6]]  ;;  %v1907_v2 = vstv %s342_s16  ;;  %v964_v47 = vld [vmem:[%s1894_s0] sm:$0xff]  ;;  %v2022_v53 = vld [vmem:[%s1883_s28 + $0x29] sm:$0x3f]  ;;  %v2029_v56 = vld [vmem:[%s1883_s28 + $0x31] sm:$0xff]  ;;  %s1537_s9 = scalar_lea.vmem %s2884_s25, 3584 }
  0x98   : > { %s1911_s11 = sld [smem:[#allocation2 + $0x7]]  ;;  %v1914_v6 = vstv %s1328_s7  ;;  %v388_v9 = vmul.f32 %v1907_v2, %v355_v0  ;;  %v389_v15 = vmul.f32 %v1907_v2, %v356_v4  ;;  %v390_v16 = vmul.f32 %v1907_v2, %v357_v1  ;;  %v965_v60 = vld [vmem:[%s1894_s0 + $0x8] sm:$0x3f]  ;;  %v2045_v62 = vld [vmem:[%s1883_s28 + $0x32] sm:$0xff]  ;;  %p1538_p4 = scmp.ne.s32.totalorder %s2884_s25, %s1537_s9 }
  0x99   : > { %s1918_s1 = sld [smem:[#allocation2 + $0x8]]  ;;  %v1922_v11 = vstv %s1329_s17  ;;  %v1930_v14 = vmul.f32 %v1914_v6, %v558_v3  ;;  %v1942_v19 = vmul.f32 %v1914_v6, %v559_v8  ;;  %v1945_v20 = vmul.f32 %v1914_v6, %v560_v5  ;;  %v966_v63 = vld [vmem:[%s1894_s0 + $0x10] sm:$0xff]  ;;  %v1050_v8 = vld [vmem:[%s1901_s3 + $0x8] sm:$0x3f]  ;;  %p2977_p7 = scmp.ne.s32.totalorder %s2959_s6, 0 }
  0x9a   : > { %s1925_s26 = sld [smem:[#allocation7]]  ;;  %v1927_v13 = vstv %s1330_s23  ;;  %v1939_v18 = vmul.f32 %v1922_v11, %v761_v7  ;;  %v1957_v25 = vmul.f32 %v1922_v11, %v762_v12  ;;  %v1960_v26 = vmul.f32 %v1922_v11, %v763_v10 }
  0x9b   : > { %s1934_s27 = sld [smem:[#allocation7 + $0x1]]  ;;  %v1936_v17 = vstv %s1331_s10  ;;  %v445_v22 = vmul.f32 %v1927_v13, %v357_v1  ;;  %v446_v30 = vmul.f32 %v1927_v13, %v358_v24  ;;  %v447_v32 = vmul.f32 %v1927_v13, %v1950_v21  ;;  %v1049_v1 = vld [vmem:[%s1901_s3] sm:$0xff]  ;;  %p1539_p2 = pnand %p1538_p4, %p2977_p7 }
  0x9c   : > { %s1947_s12 = sld [smem:[#allocation7 + $0x2]]  ;;  %v1953_v23 = vstv %s1332_s14  ;;  %v1969_v29 = vmul.f32 %v1936_v17, %v560_v5  ;;  %v649_v36 = vmul.f32 %v1936_v17, %v561_v31  ;;  %v650_v38 = vmul.f32 %v1936_v17, %v1966_v28 }
  0x9d   : > { %v1963_v27 = vstv %s1904_s24  ;;  %v1982_v35 = vmul.f32 %v1953_v23, %v763_v10  ;;  %v1997_v42 = vmul.f32 %v1953_v23, %v764_v37  ;;  %v2004_v44 = vmul.f32 %v1953_v23, %v1979_v34  ;;  %v1051_v10 = vld [vmem:[%s1901_s3 + $0x10] sm:$0xff]  ;;  %p1540_p8 = pneg %p1539_p2 }
  0x9e   : > { %v1976_v33 = vstv %s1911_s11  ;;  %v502_v39 = vmul.f32 %v1963_v27, %v1950_v21  ;;  %v503_v48 = vmul.f32 %v1963_v27, %v1994_v41  ;;  %v504_v49 = vmul.f32 %v1963_v27, %v2000_v43 }
  0x9f   : > { %v1991_v40 = vstv %s1918_s1  ;;  %v705_v46 = vmul.f32 %v1976_v33, %v1966_v28  ;;  %v706_v58 = vmul.f32 %v1976_v33, %v2022_v53  ;;  %v707_v61 = vmul.f32 %v1976_v33, %v2029_v56 }
  0xa0   : > { %v2007_v45 = vstv %s1925_s26  ;;  %v2033_v57 = vmul.f32 %v1991_v40, %v1979_v34  ;;  %v2039_v59 = vmul.f32 %v1991_v40, %v2025_v54  ;;  %v2054_v5 = vmul.f32 %v1991_v40, %v2045_v62 }
  0xa1   : > { %v416_v50 = vadd.f32 %v388_v9, %v2007_v45  ;;  %v2018_v51 = vstv %s1934_s27  ;;  %v417_v52 = vadd.f32 %v389_v15, %v2007_v45  ;;  %v418_v55 = vadd.f32 %v390_v16, %v2007_v45 }
  0xa2   : > { %v2050_v3 = vstv %s1947_s12  ;;  %v2057_v7 = vmul.f32 %v2018_v51, %v964_v47  ;;  %v391_v12 = vmul.f32 %v1907_v2, %v358_v24  ;;  %v448_v15 = vmul.f32 %v1927_v13, %v1994_v41 }
  0xa3   : > { %v473_v0 = vadd.f32 %v445_v22, %v416_v50  ;;  %v474_v4 = vadd.f32 %v446_v30, %v417_v52  ;;  %v475_v9 = vadd.f32 %v447_v32, %v418_v55  ;;  %v2065_v30 = vmul.f32 %v2018_v51, %v965_v60  ;;  %v2071_v52 = vld [vmem:[%s1883_s28 + $0x38] sm:$0x3f] }
  0xa4   : > { %v2068_v50 = vmul.f32 %v2018_v51, %v966_v63  ;;  %v2074_v47 = vmul.f32 %v2050_v3, %v1049_v1  ;;  %v419_v24 = vadd.f32 %v391_v12, %v2007_v45  ;;  %v505_v55 = vmul.f32 %v1963_v27, %v2071_v52 }
  0xa5   : > { %v530_v16 = vadd.f32 %v502_v39, %v473_v0  ;;  %v531_v22 = vadd.f32 %v503_v48, %v474_v4  ;;  %v532_v32 = vadd.f32 %v504_v49, %v475_v9  ;;  %v1079_v60 = vmul.f32 %v2050_v3, %v1050_v8  ;;  %v2087_v49 = vld [vmem:[%s1883_s28 + $0x39] sm:$0x3f] }
  0xa6   : > { %v2083_v63 = vmul.f32 %v2050_v3, %v1051_v10  ;;  %v476_v1 = vadd.f32 %v448_v15, %v419_v24  ;;  %v594_v4 = vmul.f32 %v1914_v6, %v561_v31  ;;  %v708_v8 = vmul.f32 %v1976_v33, %v2087_v49  ;;  %v2104_v24 = vld [vmem:[%s1883_s28 + $0x3a] sm:$0x3f] }
  0xa7   : > { %v619_v39 = vadd.f32 %v1930_v14, %v530_v16  ;;  %v620_v48 = vadd.f32 %v1942_v19, %v531_v22  ;;  %v621_v0 = vadd.f32 %v1945_v20, %v532_v32  ;;  %v651_v14 = vmul.f32 %v1936_v17, %v2022_v53  ;;  %v2099_v16 = vld [vmem:[%s1883_s28 + $0x40] sm:$0xff] }
  0xa8   : > { %v392_v20 = vmul.f32 %v1907_v2, %v1950_v21  ;;  %v533_v12 = vadd.f32 %v505_v55, %v476_v1  ;;  %v797_v15 = vmul.f32 %v1922_v11, %v764_v37  ;;  %v449_v31 = vmul.f32 %v1927_v13, %v2000_v43 }
  0xa9   : > { %v676_v19 = vadd.f32 %v1969_v29, %v619_v39  ;;  %v677_v9 = vadd.f32 %v649_v36, %v620_v48  ;;  %v678_v10 = vadd.f32 %v650_v38, %v621_v0  ;;  %v967_v29 = vld [vmem:[%s1894_s0 + $0x18] sm:$0x3f]  ;;  %v506_v21 = vmul.f32 %v1963_v27, %v2099_v16 }
  0xaa   : > { %v1052_v36 = vld [vmem:[%s1901_s3 + $0x18] sm:$0x3f]  ;;  %v420_v39 = vadd.f32 %v392_v20, %v2007_v45  ;;  %v622_v55 = vadd.f32 %v594_v4, %v533_v12  ;;  %v854_v37 = vmul.f32 %v1953_v23, %v2025_v54  ;;  %v911_v48 = vmul.f32 %v1991_v40, %v2104_v24 }
  0xab   : > { %v733_v22 = vadd.f32 %v705_v46, %v676_v19  ;;  %v734_v32 = vadd.f32 %v706_v58, %v677_v9  ;;  %v735_v38 = vadd.f32 %v707_v61, %v678_v10  ;;  %v595_v1 = vmul.f32 %v1914_v6, %v1966_v28 }
  0xac   : > { %v477_v0 = vadd.f32 %v449_v31, %v420_v39  ;;  %v679_v9 = vadd.f32 %v651_v14, %v622_v55  ;;  %v996_v61 = vmul.f32 %v2018_v51, %v967_v29  ;;  %v1081_v4 = vmul.f32 %v2050_v3, %v1052_v36 }
  0xad   : > { %v822_v46 = vadd.f32 %v1939_v18, %v733_v22  ;;  %v823_v58 = vadd.f32 %v1957_v25, %v734_v32  ;;  %v824_v19 = vadd.f32 %v1960_v26, %v735_v38  ;;  %v2125_v18 = vld [vmem:[%s1883_s28 + $0x41] sm:$0xff]  ;;  %v652_v25 = vmul.f32 %v1936_v17, %v2029_v56 }
  0xae   : > { %v534_v12 = vadd.f32 %v506_v21, %v477_v0  ;;  %v736_v31 = vadd.f32 %v708_v8, %v679_v9  ;;  %v709_v26 = vmul.f32 %v1976_v33, %v2125_v18  ;;  %v393_v14 = vmul.f32 %v1907_v2, %v1994_v41  ;;  %v2137_v32 = vld [vmem:[%s1883_s28 + $0x48] sm:$0x3f] }
  0xaf   : > { %v879_v20 = vadd.f32 %v1982_v35, %v822_v46  ;;  %v880_v10 = vadd.f32 %v1997_v42, %v823_v58  ;;  %v881_v28 = vadd.f32 %v2004_v44, %v824_v19  ;;  %v450_v29 = vmul.f32 %v1927_v13, %v2071_v52 }
  0xb0   : > { %v623_v42 = vadd.f32 %v595_v1, %v534_v12  ;;  %v825_v44 = vadd.f32 %v797_v15, %v736_v31  ;;  %v421_v8 = vadd.f32 %v393_v14, %v2007_v45  ;;  %v507_v39 = vmul.f32 %v1963_v27, %v2137_v32  ;;  %v2182_v31 = vld [vmem:[%s1883_s28 + $0x50] sm:$0xff] }
  0xb1   : > { %v936_v22 = vadd.f32 %v2033_v57, %v879_v20  ;;  %v937_v35 = vadd.f32 %v2039_v59, %v880_v10  ;;  %v938_v36 = vadd.f32 %v2054_v5, %v881_v28  ;;  %v798_v21 = vmul.f32 %v1922_v11, %v1979_v34  ;;  %v2157_v34 = vld [vmem:[%s1883_s28 + $0x42] sm:$0xff] }
  0xb2   : > { %v680_v59 = vadd.f32 %v652_v25, %v623_v42  ;;  %v882_v5 = vadd.f32 %v854_v37, %v825_v44  ;;  %v478_v15 = vadd.f32 %v450_v29, %v421_v8  ;;  %v596_v55 = vmul.f32 %v1914_v6, %v2022_v53  ;;  %v969_v29 = vld [vmem:[%s1894_s0 + $0x28] sm:$0x3f] }
  0xb3   : > { %v1021_v41 = vadd.f32 %v2057_v7, %v936_v22  ;;  %v1022_v57 = vadd.f32 %v2065_v30, %v937_v35  ;;  %v1023_v38 = vadd.f32 %v2068_v50, %v938_v36  ;;  %v855_v7 = vmul.f32 %v1953_v23, %v2045_v62  ;;  %v968_v50 = vld [vmem:[%s1894_s0 + $0x20] sm:$0xff] }
  0xb4   : > { %v737_v0 = vadd.f32 %v709_v26, %v680_v59  ;;  %v939_v1 = vadd.f32 %v911_v48, %v882_v5  ;;  %v535_v37 = vadd.f32 %v507_v39, %v478_v15  ;;  %v653_v19 = vmul.f32 %v1936_v17, %v2087_v49  ;;  %v1053_v48 = vld [vmem:[%s1901_s3 + $0x20] sm:$0xff] }
  0xb5   : > { %v1106_v46 = vadd.f32 %v2074_v47, %v1021_v41  ;;  %v1107_v58 = vadd.f32 %v1079_v60, %v1022_v57  ;;  %v1108_v30 = vadd.f32 %v2083_v63, %v1023_v38  ;;  %v912_v47 = vmul.f32 %v1991_v40, %v2157_v34  ;;  %v2170_v60 = vld [vmem:[%s1883_s28 + $0x49] sm:$0x3f] }
  0xb6   : > { %v826_v53 = vadd.f32 %v798_v21, %v737_v0  ;;  %v1024_v63 = vadd.f32 %v996_v61, %v939_v1  ;;  %v624_v9 = vadd.f32 %v596_v55, %v535_v37  ;;  %v710_v20 = vmul.f32 %v1976_v33, %v2170_v60  ;;  %v2210_v55 = vld [vmem:[%s1883_s28 + $0x58] sm:$0x3f] }
  0xb7   : > { %1134 = vst [vmem:[%s2163_s30] sm:$0xff] %v1106_v46  ;;  %1135 = vst [vmem:[%s2163_s30 + $0x8] sm:$0x3f] %v1107_v58  ;;  %v394_v10 = vmul.f32 %v1907_v2, %v2000_v43  ;;  %v997_v25 = vmul.f32 %v2018_v51, %v968_v50  ;;  %v799_v28 = vmul.f32 %v1922_v11, %v2025_v54  ;;  %v2193_v54 = vld [vmem:[%s1883_s28 + $0x4a] sm:$0x3f]  ;;  %v2214_v0 = vld [vmem:[%s1883_s28 + $0x51] sm:$0xff] }
  0xb8   : > { %1136 = vst [vmem:[%s2163_s30 + $0x10] sm:$0xff] %v1108_v30  ;;  %v883_v12 = vadd.f32 %v855_v7, %v826_v53  ;;  %v451_v61 = vmul.f32 %v1927_v13, %v2099_v16  ;;  %v1109_v26 = vadd.f32 %v1081_v4, %v1024_v63  ;;  %v681_v14 = vadd.f32 %v653_v19, %v624_v9  ;;  %v1054_v4 = vld [vmem:[%s1901_s3 + $0x28] sm:$0x3f]  ;;  %v2222_v37 = vld [vmem:[%s1883_s28 + $0x52] sm:$0xff] }
  0xb9   : > { %v422_v22 = vadd.f32 %v394_v10, %v2007_v45  ;;  %v508_v35 = vmul.f32 %v1963_v27, %v2182_v31  ;;  %v1082_v42 = vmul.f32 %v2050_v3, %v1053_v48  ;;  %v856_v44 = vmul.f32 %v1953_v23, %v2104_v24  ;;  %v970_v53 = vld [vmem:[%s1894_s0 + $0x30] sm:$0xff] }
  0xba   : > { %v940_v43 = vadd.f32 %v912_v47, %v883_v12  ;;  %1137 = vst [vmem:[%s2163_s30 + $0x18] sm:$0x3f] %v1109_v26  ;;  %v738_v36 = vadd.f32 %v710_v20, %v681_v14  ;;  %v597_v39 = vmul.f32 %v1914_v6, %v2029_v56  ;;  %v913_v57 = vmul.f32 %v1991_v40, %v2193_v54  ;;  %v1055_v47 = vld [vmem:[%s1901_s3 + $0x30] sm:$0xff] }
  0xbb   : > { %v479_v8 = vadd.f32 %v451_v61, %v422_v22  ;;  %v395_v59 = vmul.f32 %v1907_v2, %v2071_v52  ;;  %v452_v21 = vmul.f32 %v1927_v13, %v2137_v32  ;;  %v998_v5 = vmul.f32 %v2018_v51, %v969_v29 }
  0xbc   : > { %v1025_v41 = vadd.f32 %v997_v25, %v940_v43  ;;  %v827_v38 = vadd.f32 %v799_v28, %v738_v36  ;;  %v654_v56 = vmul.f32 %v1936_v17, %v2125_v18  ;;  %v1083_v58 = vmul.f32 %v2050_v3, %v1054_v4  ;;  %v2247_v43 = vld [vmem:[%s1883_s28 + $0x59] sm:$0x3f] }
  0xbd   : > { %v536_v15 = vadd.f32 %v508_v35, %v479_v8  ;;  %v423_v52 = vadd.f32 %v395_v59, %v2007_v45  ;;  %v509_v7 = vmul.f32 %v1963_v27, %v2210_v55  ;;  %v711_v50 = vmul.f32 %v1976_v33, %v2214_v0  ;;  %v971_v8 = vld [vmem:[%s1894_s0 + $0x38] sm:$0x3f] }
  0xbe   : > { %v1110_v46 = vadd.f32 %v1082_v42, %v1025_v41  ;;  %v884_v30 = vadd.f32 %v856_v44, %v827_v38  ;;  %v800_v19 = vmul.f32 %v1922_v11, %v2045_v62  ;;  %v857_v63 = vmul.f32 %v1953_v23, %v2157_v34  ;;  %v1056_v59 = vld [vmem:[%s1901_s3 + $0x38] sm:$0x3f] }
  0xbf   : > { %v625_v1 = vadd.f32 %v597_v39, %v536_v15  ;;  %v914_v48 = vmul.f32 %v1991_v40, %v2222_v37  ;;  %v480_v9 = vadd.f32 %v452_v21, %v423_v52  ;;  %v598_v20 = vmul.f32 %v1914_v6, %v2087_v49  ;;  %v2244_v49 = vld [vmem:[%s1883_s28 + $0x60] sm:$0xff] }
  0xc0   : > { %1138 = vst [vmem:[%s2163_s30 + $0x20] sm:$0xff] %v1110_v46  ;;  %v941_v10 = vadd.f32 %v913_v57, %v884_v30  ;;  %v396_v62 = vmul.f32 %v1907_v2, %v2099_v16  ;;  %v453_v25 = vmul.f32 %v1927_v13, %v2182_v31  ;;  %v999_v28 = vmul.f32 %v2018_v51, %v970_v53  ;;  %v2260_v57 = vld [vmem:[%s1883_s28 + $0x5a] sm:$0x3f] }
  0xc1   : > { %v682_v12 = vadd.f32 %v654_v56, %v625_v1  ;;  %v1084_v61 = vmul.f32 %v2050_v3, %v1055_v47  ;;  %v537_v26 = vadd.f32 %v509_v7, %v480_v9  ;;  %v655_v14 = vmul.f32 %v1936_v17, %v2170_v60 }
  0xc2   : > { %v1026_v22 = vadd.f32 %v998_v5, %v941_v10  ;;  %v424_v16 = vadd.f32 %v396_v62, %v2007_v45  ;;  %v510_v42 = vmul.f32 %v1963_v27, %v2244_v49  ;;  %v712_v36 = vmul.f32 %v1976_v33, %v2247_v43  ;;  %v2290_v10 = vld [vmem:[%s1883_s28 + $0x62] sm:$0xff] }
  0xc3   : > { %v739_v35 = vadd.f32 %v711_v50, %v682_v12  ;;  %v626_v29 = vadd.f32 %v598_v20, %v537_v26  ;;  %v801_v44 = vmul.f32 %v1922_v11, %v2104_v24  ;;  %v858_v4 = vmul.f32 %v1953_v23, %v2193_v54  ;;  %v2280_v50 = vld [vmem:[%s1883_s28 + $0x61] sm:$0xff] }
  0xc4   : > { %v1111_v39 = vadd.f32 %v1083_v58, %v1026_v22  ;;  %v481_v21 = vadd.f32 %v453_v25, %v424_v16  ;;  %v599_v38 = vmul.f32 %v1914_v6, %v2125_v18  ;;  %v915_v15 = vmul.f32 %v1991_v40, %v2260_v57  ;;  %v2276_v18 = vld [vmem:[%s1883_s28 + $0x68] sm:$0x3f]  ;;  %v972_v22 = vld [vmem:[%s1894_s0 + $0x40] sm:$0xff] }
  0xc5   : > { %v828_v41 = vadd.f32 %v800_v19, %v739_v35  ;;  %v683_v5 = vadd.f32 %v655_v14, %v626_v29  ;;  %v397_v24 = vmul.f32 %v1907_v2, %v2137_v32  ;;  %v454_v56 = vmul.f32 %v1927_v13, %v2210_v55  ;;  %v1057_v16 = vld [vmem:[%s1901_s3 + $0x40] sm:$0xff] }
  0xc6   : > { %1139 = vst [vmem:[%s2163_s30 + $0x28] sm:$0x3f] %v1111_v39  ;;  %v1000_v58 = vmul.f32 %v2018_v51, %v971_v8  ;;  %v538_v52 = vadd.f32 %v510_v42, %v481_v21  ;;  %v656_v7 = vmul.f32 %v1936_v17, %v2214_v0  ;;  %v1085_v1 = vmul.f32 %v2050_v3, %v1056_v59  ;;  %v2310_v8 = vld [vmem:[%s1883_s28 + $0x69] sm:$0x3f] }
  0xc7   : > { %v885_v46 = vadd.f32 %v857_v63, %v828_v41  ;;  %v740_v30 = vadd.f32 %v712_v36, %v683_v5  ;;  %v425_v32 = vadd.f32 %v397_v24, %v2007_v45  ;;  %v511_v19 = vmul.f32 %v1963_v27, %v2276_v18  ;;  %v2305_v36 = vld [vmem:[%s1883_s28 + $0x70] sm:$0xff] }
  0xc8   : > { %v627_v47 = vadd.f32 %v599_v38, %v538_v52  ;;  %v713_v63 = vmul.f32 %v1976_v33, %v2280_v50  ;;  %v802_v9 = vmul.f32 %v1922_v11, %v2157_v34  ;;  %v859_v12 = vmul.f32 %v1953_v23, %v2222_v37 }
  0xc9   : > { %v942_v53 = vadd.f32 %v914_v48, %v885_v46  ;;  %v829_v20 = vadd.f32 %v801_v44, %v740_v30  ;;  %v482_v62 = vadd.f32 %v454_v56, %v425_v32  ;;  %v600_v25 = vmul.f32 %v1914_v6, %v2170_v60  ;;  %v973_v30 = vld [vmem:[%s1894_s0 + $0x48] sm:$0x3f] }
  0xca   : > { %v684_v26 = vadd.f32 %v656_v7, %v627_v47  ;;  %v916_v14 = vmul.f32 %v1991_v40, %v2290_v10  ;;  %v398_v34 = vmul.f32 %v1907_v2, %v2182_v31  ;;  %v657_v29 = vmul.f32 %v1936_v17, %v2247_v43 }
  0xcb   : > { %v1027_v48 = vadd.f32 %v999_v28, %v942_v53  ;;  %v886_v35 = vadd.f32 %v858_v4, %v829_v20  ;;  %v539_v42 = vadd.f32 %v511_v19, %v482_v62  ;;  %v455_v60 = vmul.f32 %v1927_v13, %v2244_v49  ;;  %v2328_v19 = vld [vmem:[%s1883_s28 + $0x71] sm:$0xff]  ;;  %v1058_v62 = vld [vmem:[%s1901_s3 + $0x48] sm:$0x3f] }
  0xcc   : > { %v741_v44 = vadd.f32 %v713_v63, %v684_v26  ;;  %v426_v39 = vadd.f32 %v398_v34, %v2007_v45  ;;  %v512_v31 = vmul.f32 %v1963_v27, %v2305_v36  ;;  %v1001_v41 = vmul.f32 %v2018_v51, %v972_v22  ;;  %v2337_v63 = vld [vmem:[%s1883_s28 + $0x78] sm:$0x3f] }
  0xcd   : > { %v1112_v28 = vadd.f32 %v1084_v61, %v1027_v48  ;;  %v943_v4 = vadd.f32 %v915_v15, %v886_v35  ;;  %v628_v59 = vadd.f32 %v600_v25, %v539_v42  ;;  %v714_v21 = vmul.f32 %v1976_v33, %v2310_v8 }
  0xce   : > { %v830_v38 = vadd.f32 %v802_v9, %v741_v44  ;;  %v1086_v61 = vmul.f32 %v2050_v3, %v1057_v16  ;;  %v483_v5 = vadd.f32 %v455_v60, %v426_v39  ;;  %v601_v24 = vmul.f32 %v1914_v6, %v2214_v0 }
  0xcf   : > { %1140 = vst [vmem:[%s2163_s30 + $0x30] sm:$0xff] %v1112_v28  ;;  %v1028_v56 = vadd.f32 %v1000_v58, %v943_v4  ;;  %v685_v46 = vadd.f32 %v657_v29, %v628_v59  ;;  %v803_v15 = vmul.f32 %v1922_v11, %v2193_v54  ;;  %v860_v52 = vmul.f32 %v1953_v23, %v2260_v57  ;;  %v2358_v28 = vld [vmem:[%s1883_s28 + $0x72] sm:$0xff] }
  0xd0   : > { %v887_v7 = vadd.f32 %v859_v12, %v830_v38  ;;  %v540_v32 = vadd.f32 %v512_v31, %v483_v5  ;;  %v658_v53 = vmul.f32 %v1936_v17, %v2280_v50  ;;  %v399_v0 = vmul.f32 %v1907_v2, %v2210_v55  ;;  %v2342_v12 = vld [vmem:[%s1883_s28 + $0x6a] sm:$0x3f]  ;;  %v974_v4 = vld [vmem:[%s1894_s0 + $0x50] sm:$0xff] }
  0xd1   : > { %v1113_v58 = vadd.f32 %v1085_v1, %v1028_v56  ;;  %v742_v47 = vadd.f32 %v714_v21, %v685_v46  ;;  %v715_v54 = vmul.f32 %v1976_v33, %v2328_v19  ;;  %v456_v9 = vmul.f32 %v1927_v13, %v2276_v18  ;;  %v2367_v21 = vld [vmem:[%s1883_s28 + $0x79] sm:$0x3f]  ;;  %v2376_v56 = vld [vmem:[%s1883_s28 + $0x80] sm:$0xff] }
  0xd2   : > { %v944_v20 = vadd.f32 %v916_v14, %v887_v7  ;;  %v629_v25 = vadd.f32 %v601_v24, %v540_v32  ;;  %v427_v48 = vadd.f32 %v399_v0, %v2007_v45  ;;  %v513_v55 = vmul.f32 %v1963_v27, %v2337_v63 }
  0xd3   : > { %1141 = vst [vmem:[%s2163_s30 + $0x38] sm:$0x3f] %v1113_v58  ;;  %v831_v1 = vadd.f32 %v803_v15, %v742_v47  ;;  %v917_v26 = vmul.f32 %v1991_v40, %v2342_v12  ;;  %v1002_v22 = vmul.f32 %v2018_v51, %v973_v30  ;;  %v804_v14 = vmul.f32 %v1922_v11, %v2222_v37 }
  0xd4   : > { %v1029_v34 = vadd.f32 %v1001_v41, %v944_v20  ;;  %v686_v35 = vadd.f32 %v658_v53, %v629_v25  ;;  %v484_v16 = vadd.f32 %v456_v9, %v427_v48  ;;  %v602_v42 = vmul.f32 %v1914_v6, %v2247_v43  ;;  %v1059_v41 = vld [vmem:[%s1901_s3 + $0x50] sm:$0xff] }
  0xd5   : > { %v888_v29 = vadd.f32 %v860_v52, %v831_v1  ;;  %v1087_v60 = vmul.f32 %v2050_v3, %v1058_v62  ;;  %v861_v44 = vmul.f32 %v1953_v23, %v2290_v10  ;;  %v659_v39 = vmul.f32 %v1936_v17, %v2310_v8  ;;  %v975_v1 = vld [vmem:[%s1894_s0 + $0x58] sm:$0x3f] }
  0xd6   : > { %v1114_v37 = vadd.f32 %v1086_v61, %v1029_v34  ;;  %v743_v31 = vadd.f32 %v715_v54, %v686_v35  ;;  %v541_v59 = vadd.f32 %v513_v55, %v484_v16  ;;  %v400_v43 = vmul.f32 %v1907_v2, %v2244_v49  ;;  %v2397_v55 = vld [vmem:[%s1883_s28 + $0x7a] sm:$0x3f]  ;;  %v2409_v34 = vld [vmem:[%s1883_s28 + $0x81] sm:$0xff] }
  0xd7   : > { %v945_v38 = vadd.f32 %v917_v26, %v888_v29  ;;  %v918_v5 = vmul.f32 %v1991_v40, %v2358_v28  ;;  %v716_v24 = vmul.f32 %v1976_v33, %v2367_v21  ;;  %v457_v61 = vmul.f32 %v1927_v13, %v2305_v36 }
  0xd8   : > { %1142 = vst [vmem:[%s2163_s30 + $0x40] sm:$0xff] %v1114_v37  ;;  %v832_v46 = vadd.f32 %v804_v14, %v743_v31  ;;  %v630_v15 = vadd.f32 %v602_v42, %v541_v59  ;;  %v428_v52 = vadd.f32 %v400_v43, %v2007_v45  ;;  %v514_v49 = vmul.f32 %v1963_v27, %v2376_v56 }
  0xd9   : > { %v1030_v7 = vadd.f32 %v1002_v22, %v945_v38  ;;  %v1003_v30 = vmul.f32 %v2018_v51, %v974_v4  ;;  %v1088_v32 = vmul.f32 %v2050_v3, %v1059_v41  ;;  %v805_v53 = vmul.f32 %v1922_v11, %v2260_v57  ;;  %v2401_v22 = vld [vmem:[%s1883_s28 + $0x88] sm:$0x3f]  ;;  %v976_v38 = vld [vmem:[%s1894_s0 + $0x60] sm:$0xff] }
  0xda   : > { %v889_v0 = vadd.f32 %v861_v44, %v832_v46  ;;  %v687_v58 = vadd.f32 %v659_v39, %v630_v15  ;;  %v485_v47 = vadd.f32 %v457_v61, %v428_v52  ;;  %v603_v54 = vmul.f32 %v1914_v6, %v2280_v50  ;;  %v1060_v39 = vld [vmem:[%s1901_s3 + $0x58] sm:$0x3f] }
  0xdb   : > { %v1115_v9 = vadd.f32 %v1087_v60, %v1030_v7  ;;  %v862_v20 = vmul.f32 %v1953_v23, %v2342_v12  ;;  %v660_v62 = vmul.f32 %v1936_v17, %v2328_v19  ;;  %v401_v25 = vmul.f32 %v1907_v2, %v2276_v18  ;;  %v2437_v7 = vld [vmem:[%s1883_s28 + $0x90] sm:$0xff] }
  0xdc   : > { %v946_v48 = vadd.f32 %v918_v5, %v889_v0  ;;  %v744_v57 = vadd.f32 %v716_v24, %v687_v58  ;;  %v542_v26 = vadd.f32 %v514_v49, %v485_v47  ;;  %v458_v50 = vmul.f32 %v1927_v13, %v2337_v63  ;;  %v2434_v49 = vld [vmem:[%s1883_s28 + $0x89] sm:$0x3f] }
  0xdd   : > { %1143 = vst [vmem:[%s2163_s30 + $0x48] sm:$0x3f] %v1115_v9  ;;  %v919_v14 = vmul.f32 %v1991_v40, %v2397_v55  ;;  %v429_v18 = vadd.f32 %v401_v25, %v2007_v45  ;;  %v515_v35 = vmul.f32 %v1963_v27, %v2401_v22  ;;  %v717_v60 = vmul.f32 %v1976_v33, %v2409_v34 }
  0xde   : > { %v1031_v16 = vadd.f32 %v1003_v30, %v946_v48  ;;  %v833_v42 = vadd.f32 %v805_v53, %v744_v57  ;;  %v631_v29 = vadd.f32 %v603_v54, %v542_v26  ;;  %v1004_v44 = vmul.f32 %v2018_v51, %v975_v1  ;;  %v2440_v30 = vld [vmem:[%s1883_s28 + $0x82] sm:$0xff] }
  0xdf   : > { %v486_v37 = vadd.f32 %v458_v50, %v429_v18  ;;  %v604_v31 = vmul.f32 %v1914_v6, %v2310_v8  ;;  %v806_v43 = vmul.f32 %v1922_v11, %v2290_v10  ;;  %v661_v24 = vmul.f32 %v1936_v17, %v2367_v21 }
  0xe0   : > { %v1116_v4 = vadd.f32 %v1088_v32, %v1031_v16  ;;  %v890_v41 = vadd.f32 %v862_v20, %v833_v42  ;;  %v688_v59 = vadd.f32 %v660_v62, %v631_v29  ;;  %v402_v61 = vmul.f32 %v1907_v2, %v2305_v36  ;;  %v1061_v20 = vld [vmem:[%s1901_s3 + $0x60] sm:$0xff]  ;;  %v2463_v42 = vld [vmem:[%s1883_s28 + $0x98] sm:$0x3f] }
  0xe1   : > { %v543_v5 = vadd.f32 %v515_v35, %v486_v37  ;;  %v459_v46 = vmul.f32 %v1927_v13, %v2376_v56  ;;  %v1089_v15 = vmul.f32 %v2050_v3, %v1060_v39  ;;  %v863_v10 = vmul.f32 %v1953_v23, %v2358_v28  ;;  %v977_v35 = vld [vmem:[%s1894_s0 + $0x68] sm:$0x3f]  ;;  %v2473_v39 = vld [vmem:[%s1883_s28 + $0x91] sm:$0xff] }
  0xe2   : > { %1144 = vst [vmem:[%s2163_s30 + $0x50] sm:$0xff] %v1116_v4  ;;  %v947_v8 = vadd.f32 %v919_v14, %v890_v41  ;;  %v745_v52 = vadd.f32 %v717_v60, %v688_v59  ;;  %v718_v36 = vmul.f32 %v1976_v33, %v2434_v49  ;;  %v430_v53 = vadd.f32 %v402_v61, %v2007_v45 }
  0xe3   : > { %v632_v32 = vadd.f32 %v604_v31, %v543_v5  ;;  %v516_v0 = vmul.f32 %v1963_v27, %v2437_v7  ;;  %v920_v54 = vmul.f32 %v1991_v40, %v2440_v30  ;;  %v1005_v9 = vmul.f32 %v2018_v51, %v976_v38  ;;  %v1062_v5 = vld [vmem:[%s1901_s3 + $0x68] sm:$0x3f] }
  0xe4   : > { %v1032_v58 = vadd.f32 %v1004_v44, %v947_v8  ;;  %v834_v47 = vadd.f32 %v806_v43, %v745_v52  ;;  %v807_v25 = vmul.f32 %v1922_v11, %v2342_v12  ;;  %v487_v48 = vadd.f32 %v459_v46, %v430_v53  ;;  %v2470_v44 = vld [vmem:[%s1883_s28 + $0x8a] sm:$0x3f] }
  0xe5   : > { %v689_v62 = vadd.f32 %v661_v24, %v632_v32  ;;  %v605_v57 = vmul.f32 %v1914_v6, %v2328_v19  ;;  %v864_v50 = vmul.f32 %v1953_v23, %v2397_v55  ;;  %v403_v14 = vmul.f32 %v1907_v2, %v2337_v63  ;;  %v978_v32 = vld [vmem:[%s1894_s0 + $0x70] sm:$0xff] }
  0xe6   : > { %v1117_v1 = vadd.f32 %v1089_v15, %v1032_v58  ;;  %v891_v26 = vadd.f32 %v863_v10, %v834_v47  ;;  %v544_v16 = vadd.f32 %v516_v0, %v487_v48  ;;  %v662_v12 = vmul.f32 %v1936_v17, %v2409_v34 }
  0xe7   : > { %v746_v18 = vadd.f32 %v718_v36, %v689_v62  ;;  %v460_v19 = vmul.f32 %v1927_v13, %v2401_v22  ;;  %v1090_v60 = vmul.f32 %v2050_v3, %v1061_v20  ;;  %v431_v63 = vadd.f32 %v403_v14, %v2007_v45  ;;  %v2506_v20 = vld [vmem:[%s1883_s28 + $0x92] sm:$0xff] }
  0xe8   : > { %1145 = vst [vmem:[%s2163_s30 + $0x58] sm:$0x3f] %v1117_v1  ;;  %v948_v29 = vadd.f32 %v920_v54, %v891_v26  ;;  %v517_v37 = vmul.f32 %v1963_v27, %v2463_v42  ;;  %v921_v4 = vmul.f32 %v1991_v40, %v2470_v44  ;;  %v633_v41 = vadd.f32 %v605_v57, %v544_v16  ;;  %v2499_v54 = vld [vmem:[%s1883_s28 + $0x99] sm:$0x3f]  ;;  %v1063_v14 = vld [vmem:[%s1901_s3 + $0x70] sm:$0xff] }
  0xe9   : > { %v835_v31 = vadd.f32 %v807_v25, %v746_v18  ;;  %v719_v59 = vmul.f32 %v1976_v33, %v2473_v39  ;;  %v1006_v38 = vmul.f32 %v2018_v51, %v977_v35  ;;  %v488_v24 = vadd.f32 %v460_v19, %v431_v63 }
  0xea   : > { %v1033_v43 = vadd.f32 %v1005_v9, %v948_v29  ;;  %v606_v61 = vmul.f32 %v1914_v6, %v2367_v21  ;;  %v690_v8 = vadd.f32 %v662_v12, %v633_v41  ;;  %v808_v15 = vmul.f32 %v1922_v11, %v2358_v28  ;;  %v2502_v9 = vld [vmem:[%s1883_s28 + $0xa0] sm:$0xff]  ;;  %v2529_v41 = vld [vmem:[%s1883_s28 + $0xa8] sm:$0x3f] }
  0xeb   : > { %v892_v46 = vadd.f32 %v864_v50, %v835_v31  ;;  %v663_v52 = vmul.f32 %v1936_v17, %v2434_v49  ;;  %v545_v36 = vadd.f32 %v517_v37, %v488_v24  ;;  %v404_v53 = vmul.f32 %v1907_v2, %v2376_v56  ;;  %v979_v31 = vld [vmem:[%s1894_s0 + $0x78] sm:$0x3f] }
  0xec   : > { %v1118_v10 = vadd.f32 %v1090_v60, %v1033_v43  ;;  %v461_v0 = vmul.f32 %v1927_v13, %v2437_v7  ;;  %v1091_v58 = vmul.f32 %v2050_v3, %v1062_v5  ;;  %v747_v47 = vadd.f32 %v719_v59, %v690_v8  ;;  %v2539_v5 = vld [vmem:[%s1883_s28 + $0xa1] sm:$0xff] }
  0xed   : > { %v949_v21 = vadd.f32 %v921_v4, %v892_v46  ;;  %v865_v28 = vmul.f32 %v1953_v23, %v2440_v30  ;;  %v634_v62 = vadd.f32 %v606_v61, %v545_v36  ;;  %v720_v56 = vmul.f32 %v1976_v33, %v2499_v54 }
  0xee   : > { %1146 = vst [vmem:[%s2163_s30 + $0x60] sm:$0xff] %v1118_v10  ;;  %v432_v25 = vadd.f32 %v404_v53, %v2007_v45  ;;  %v518_v48 = vmul.f32 %v1963_v27, %v2502_v9  ;;  %v836_v1 = vadd.f32 %v808_v15, %v747_v47  ;;  %v922_v26 = vmul.f32 %v1991_v40, %v2506_v20 }
  0xef   : > { %v1034_v57 = vadd.f32 %v1006_v38, %v949_v21  ;;  %v1007_v50 = vmul.f32 %v2018_v51, %v978_v32  ;;  %v691_v18 = vadd.f32 %v663_v52, %v634_v62  ;;  %v809_v35 = vmul.f32 %v1922_v11, %v2397_v55  ;;  %v2536_v38 = vld [vmem:[%s1883_s28 + $0x9a] sm:$0x3f]  ;;  %v980_v62 = vld [vmem:[%s1894_s0 + $0x80] sm:$0xff] }
  0xf0   : > { %v489_v16 = vadd.f32 %v461_v0, %v432_v25  ;;  %v607_v12 = vmul.f32 %v1914_v6, %v2409_v34  ;;  %v893_v29 = vadd.f32 %v865_v28, %v836_v1  ;;  %v866_v60 = vmul.f32 %v1953_v23, %v2470_v44  ;;  %v1064_v32 = vld [vmem:[%s1901_s3 + $0x78] sm:$0x3f] }
  0xf1   : > { %v1119_v19 = vadd.f32 %v1091_v58, %v1034_v57  ;;  %v405_v63 = vmul.f32 %v1907_v2, %v2401_v22  ;;  %v748_v37 = vadd.f32 %v720_v56, %v691_v18  ;;  %v664_v55 = vmul.f32 %v1936_v17, %v2473_v39 }
  0xf2   : > { %v546_v4 = vadd.f32 %v518_v48, %v489_v16  ;;  %v462_v34 = vmul.f32 %v1927_v13, %v2463_v42  ;;  %v950_v59 = vadd.f32 %v922_v26, %v893_v29  ;;  %v1092_v43 = vmul.f32 %v2050_v3, %v1063_v14  ;;  %v2565_v26 = vld [vmem:[%s1883_s28 + $0xa9] sm:$0x3f] }
  0xf3   : > { %1147 = vst [vmem:[%s2163_s30 + $0x68] sm:$0x3f] %v1119_v19  ;;  %v433_v22 = vadd.f32 %v405_v63, %v2007_v45  ;;  %v519_v24 = vmul.f32 %v1963_v27, %v2529_v41  ;;  %v837_v61 = vadd.f32 %v809_v35, %v748_v37  ;;  %v923_v46 = vmul.f32 %v1991_v40, %v2536_v38  ;;  %v2572_v14 = vld [vmem:[%s1883_s28 + $0xa2] sm:$0xff] }
  0xf4   : > { %v635_v8 = vadd.f32 %v607_v12, %v546_v4  ;;  %v721_v15 = vmul.f32 %v1976_v33, %v2539_v5  ;;  %v1035_v52 = vadd.f32 %v1007_v50, %v950_v59  ;;  %v1008_v10 = vmul.f32 %v2018_v51, %v979_v31  ;;  %v2568_v50 = vld [vmem:[%s1883_s28 + $0xb0] sm:$0xff]  ;;  %v1065_v63 = vld [vmem:[%s1901_s3 + $0x80] sm:$0xff] }
  0xf5   : > { %v490_v36 = vadd.f32 %v462_v34, %v433_v22  ;;  %v608_v53 = vmul.f32 %v1914_v6, %v2434_v49  ;;  %v894_v0 = vadd.f32 %v866_v60, %v837_v61  ;;  %v810_v58 = vmul.f32 %v1922_v11, %v2440_v30  ;;  %v981_v61 = vld [vmem:[%s1894_s0 + $0x88] sm:$0x3f] }
  0xf6   : > { %v692_v21 = vadd.f32 %v664_v55, %v635_v8  ;;  %v665_v47 = vmul.f32 %v1936_v17, %v2499_v54  ;;  %v1120_v28 = vadd.f32 %v1092_v43, %v1035_v52  ;;  %v406_v25 = vmul.f32 %v1907_v2, %v2437_v7  ;;  %v2595_v8 = vld [vmem:[%s1883_s28 + $0xb8] sm:$0x3f] }
  0xf7   : > { %v547_v56 = vadd.f32 %v519_v24, %v490_v36  ;;  %v463_v48 = vmul.f32 %v1927_v13, %v2502_v9  ;;  %v951_v49 = vadd.f32 %v923_v46, %v894_v0  ;;  %v1093_v57 = vmul.f32 %v2050_v3, %v1064_v32  ;;  %v2605_v32 = vld [vmem:[%s1883_s28 + $0xb1] sm:$0xff] }
  0xf8   : > { %v749_v1 = vadd.f32 %v721_v15, %v692_v21  ;;  %v867_v30 = vmul.f32 %v1953_v23, %v2506_v20  ;;  %1148 = vst [vmem:[%s2163_s30 + $0x70] sm:$0xff] %v1120_v28  ;;  %v722_v7 = vmul.f32 %v1976_v33, %v2565_v26  ;;  %v434_v35 = vadd.f32 %v406_v25, %v2007_v45 }
  0xf9   : > { %v636_v18 = vadd.f32 %v608_v53, %v547_v56  ;;  %v520_v16 = vmul.f32 %v1963_v27, %v2568_v50  ;;  %v1036_v12 = vadd.f32 %v1008_v10, %v951_v49  ;;  %v924_v29 = vmul.f32 %v1991_v40, %v2572_v14  ;;  %v2602_v10 = vld [vmem:[%s1883_s28 + $0xaa] sm:$0x3f] }
  0xfa   : > { %v838_v19 = vadd.f32 %v810_v58, %v749_v1  ;;  %v1009_v60 = vmul.f32 %v2018_v51, %v980_v62  ;;  %v811_v31 = vmul.f32 %v1922_v11, %v2470_v44  ;;  %v491_v4 = vadd.f32 %v463_v48, %v434_v35  ;;  %v1066_v62 = vld [vmem:[%s1901_s3 + $0x88] sm:$0x3f] }
  0xfb   : > { %v693_v37 = vadd.f32 %v665_v47, %v636_v18  ;;  %v609_v55 = vmul.f32 %v1914_v6, %v2473_v39  ;;  %v1121_v34 = vadd.f32 %v1093_v57, %v1036_v12  ;;  %v868_v43 = vmul.f32 %v1953_v23, %v2536_v38  ;;  %v982_v18 = vld [vmem:[%s1894_s0 + $0x90] sm:$0xff] }
  0xfc   : > { %v895_v59 = vadd.f32 %v867_v30, %v838_v19  ;;  %v407_v22 = vmul.f32 %v1907_v2, %v2463_v42  ;;  %v548_v46 = vadd.f32 %v520_v16, %v491_v4  ;;  %v666_v44 = vmul.f32 %v1936_v17, %v2539_v5 }
  0xfd   : > { %v750_v24 = vadd.f32 %v722_v7, %v693_v37  ;;  %v464_v39 = vmul.f32 %v1927_v13, %v2529_v41  ;;  %1149 = vst [vmem:[%s2163_s30 + $0x78] sm:$0x3f] %v1121_v34  ;;  %v1094_v52 = vmul.f32 %v2050_v3, %v1065_v63  ;;  %v521_v36 = vmul.f32 %v1963_v27, %v2595_v8  ;;  %v2638_v63 = vld [vmem:[%s1883_s28 + $0xb2] sm:$0xff] }
  0xfe   : > { %v952_v15 = vadd.f32 %v924_v29, %v895_v59  ;;  %v435_v42 = vadd.f32 %v407_v22, %v2007_v45  ;;  %v925_v0 = vmul.f32 %v1991_v40, %v2602_v10  ;;  %v637_v21 = vadd.f32 %v609_v55, %v548_v46  ;;  %v2631_v29 = vld [vmem:[%s1883_s28 + $0xb9] sm:$0x3f]  ;;  %v1067_v22 = vld [vmem:[%s1901_s3 + $0x90] sm:$0xff] }
  0xff   : > { %v839_v53 = vadd.f32 %v811_v31, %v750_v24  ;;  %v723_v58 = vmul.f32 %v1976_v33, %v2605_v32  ;;  %v1010_v28 = vmul.f32 %v2018_v51, %v981_v61  ;;  %v610_v25 = vmul.f32 %v1914_v6, %v2499_v54 }
 0x100   : > { %v1037_v47 = vadd.f32 %v1009_v60, %v952_v15  ;;  %v492_v56 = vadd.f32 %v464_v39, %v435_v42  ;;  %v694_v49 = vadd.f32 %v666_v44, %v637_v21  ;;  %v812_v57 = vmul.f32 %v1922_v11, %v2506_v20  ;;  %v2634_v60 = vld [vmem:[%s1883_s28 + $0xc0] sm:$0xff]  ;;  %v2661_v21 = vld [vmem:[%s1883_s28 + $0xc8] sm:$0x3f] }
 0x101   : > { %v896_v48 = vadd.f32 %v868_v43, %v839_v53  ;;  %v667_v1 = vmul.f32 %v1936_v17, %v2565_v26  ;;  %v408_v35 = vmul.f32 %v1907_v2, %v2502_v9  ;;  %v465_v16 = vmul.f32 %v1927_v13, %v2568_v50  ;;  %v983_v53 = vld [vmem:[%s1894_s0 + $0x98] sm:$0x3f] }
 0x102   : > { %v1122_v30 = vadd.f32 %v1094_v52, %v1037_v47  ;;  %v549_v7 = vadd.f32 %v521_v36, %v492_v56  ;;  %v1095_v12 = vmul.f32 %v2050_v3, %v1066_v62  ;;  %v751_v19 = vadd.f32 %v723_v58, %v694_v49  ;;  %v2671_v62 = vld [vmem:[%s1883_s28 + $0xc1] sm:$0xff] }
 0x103   : > { %v953_v54 = vadd.f32 %v925_v0, %v896_v48  ;;  %v869_v20 = vmul.f32 %v1953_v23, %v2572_v14  ;;  %v724_v9 = vmul.f32 %v1976_v33, %v2631_v29  ;;  %v436_v31 = vadd.f32 %v408_v35, %v2007_v45 }
 0x104   : > { %1150 = vst [vmem:[%s2163_s30 + $0x80] sm:$0xff] %v1122_v30  ;;  %v638_v37 = vadd.f32 %v610_v25, %v549_v7  ;;  %v522_v4 = vmul.f32 %v1963_v27, %v2634_v60  ;;  %v840_v34 = vadd.f32 %v812_v57, %v751_v19  ;;  %v926_v59 = vmul.f32 %v1991_v40, %v2638_v63 }
 0x105   : > { %v1038_v55 = vadd.f32 %v1010_v28, %v953_v54  ;;  %v1011_v43 = vmul.f32 %v2018_v51, %v982_v18  ;;  %v813_v61 = vmul.f32 %v1922_v11, %v2536_v38  ;;  %v493_v46 = vadd.f32 %v465_v16, %v436_v31  ;;  %v2668_v28 = vld [vmem:[%s1883_s28 + $0xba] sm:$0x3f] }
 0x106   : > { %v695_v24 = vadd.f32 %v667_v1, %v638_v37  ;;  %v611_v44 = vmul.f32 %v1914_v6, %v2539_v5  ;;  %v897_v15 = vadd.f32 %v869_v20, %v840_v34  ;;  %v870_v52 = vmul.f32 %v1953_v23, %v2602_v10  ;;  %v1068_v18 = vld [vmem:[%s1901_s3 + $0x98] sm:$0x3f]  ;;  %v984_v37 = vld [vmem:[%s1894_s0 + $0xa0] sm:$0xff] }
 0x107   : > { %v1123_v39 = vadd.f32 %v1095_v12, %v1038_v55  ;;  %v409_v42 = vmul.f32 %v1907_v2, %v2529_v41  ;;  %v550_v0 = vadd.f32 %v522_v4, %v493_v46  ;;  %v668_v38 = vmul.f32 %v1936_v17, %v2605_v32 }
 0x108   : > { %v752_v36 = vadd.f32 %v724_v9, %v695_v24  ;;  %v466_v5 = vmul.f32 %v1927_v13, %v2595_v8  ;;  %v954_v58 = vadd.f32 %v926_v59, %v897_v15  ;;  %v1096_v47 = vmul.f32 %v2050_v3, %v1067_v22  ;;  %v2697_v59 = vld [vmem:[%s1883_s28 + $0xc9] sm:$0x3f] }
 0x109   : > { %1151 = vst [vmem:[%s2163_s30 + $0x88] sm:$0x3f] %v1123_v39  ;;  %v437_v41 = vadd.f32 %v409_v42, %v2007_v45  ;;  %v523_v56 = vmul.f32 %v1963_v27, %v2661_v21  ;;  %v927_v48 = vmul.f32 %v1991_v40, %v2668_v28  ;;  %v639_v49 = vadd.f32 %v611_v44, %v550_v0  ;;  %v2704_v22 = vld [vmem:[%s1883_s28 + $0xc2] sm:$0xff] }
 0x10a   : > { %v841_v25 = vadd.f32 %v813_v61, %v752_v36  ;;  %v725_v57 = vmul.f32 %v1976_v33, %v2671_v62  ;;  %v1039_v1 = vadd.f32 %v1011_v43, %v954_v58  ;;  %v1012_v30 = vmul.f32 %v2018_v51, %v983_v53  ;;  %v2700_v43 = vld [vmem:[%s1883_s28 + $0xd0] sm:$0xff]  ;;  %v1069_v42 = vld [vmem:[%s1901_s3 + $0xa0] sm:$0xff] }
 0x10b   : > { %v494_v7 = vadd.f32 %v466_v5, %v437_v41  ;;  %v612_v35 = vmul.f32 %v1914_v6, %v2565_v26  ;;  %v696_v54 = vadd.f32 %v668_v38, %v639_v49  ;;  %v814_v12 = vmul.f32 %v1922_v11, %v2572_v14  ;;  %v2727_v49 = vld [vmem:[%s1883_s28 + $0xd8] sm:$0x3f] }
 0x10c   : > { %v898_v16 = vadd.f32 %v870_v52, %v841_v25  ;;  %v669_v19 = vmul.f32 %v1936_v17, %v2631_v29  ;;  %v1124_v20 = vadd.f32 %v1096_v47, %v1039_v1  ;;  %v410_v31 = vmul.f32 %v1907_v2, %v2568_v50  ;;  %v985_v25 = vld [vmem:[%s1894_s0 + $0xa8] sm:$0x3f] }
 0x10d   : > { %v551_v9 = vadd.f32 %v523_v56, %v494_v7  ;;  %v467_v4 = vmul.f32 %v1927_v13, %v2634_v60  ;;  %v1097_v55 = vmul.f32 %v2050_v3, %v1068_v18  ;;  %v753_v34 = vadd.f32 %v725_v57, %v696_v54  ;;  %v2737_v18 = vld [vmem:[%s1883_s28 + $0xd1] sm:$0xff] }
 0x10e   : > { %v955_v26 = vadd.f32 %v927_v48, %v898_v16  ;;  %v871_v14 = vmul.f32 %v1953_v23, %v2638_v63  ;;  %1152 = vst [vmem:[%s2163_s30 + $0x90] sm:$0xff] %v1124_v20  ;;  %v726_v50 = vmul.f32 %v1976_v33, %v2697_v59  ;;  %v438_v61 = vadd.f32 %v410_v31, %v2007_v45 }
 0x10f   : > { %v640_v24 = vadd.f32 %v612_v35, %v551_v9  ;;  %v524_v46 = vmul.f32 %v1963_v27, %v2700_v43  ;;  %v842_v39 = vadd.f32 %v814_v12, %v753_v34  ;;  %v928_v15 = vmul.f32 %v1991_v40, %v2704_v22 }
 0x110   : > { %v1040_v44 = vadd.f32 %v1012_v30, %v955_v26  ;;  %v1013_v52 = vmul.f32 %v2018_v51, %v984_v37  ;;  %v815_v53 = vmul.f32 %v1922_v11, %v2602_v10  ;;  %v495_v0 = vadd.f32 %v467_v4, %v438_v61  ;;  %v2734_v30 = vld [vmem:[%s1883_s28 + $0xca] sm:$0x3f] }
 0x111   : > { %v697_v36 = vadd.f32 %v669_v19, %v640_v24  ;;  %v613_v38 = vmul.f32 %v1914_v6, %v2605_v32  ;;  %v899_v58 = vadd.f32 %v871_v14, %v842_v39  ;;  %v872_v47 = vmul.f32 %v1953_v23, %v2668_v28  ;;  %v1070_v37 = vld [vmem:[%s1901_s3 + $0xa8] sm:$0x3f]  ;;  %v986_v24 = vld [vmem:[%s1894_s0 + $0xb0] sm:$0xff] }
 0x112   : > { %v1125_v5 = vadd.f32 %v1097_v55, %v1040_v44  ;;  %v411_v41 = vmul.f32 %v1907_v2, %v2595_v8  ;;  %v552_v48 = vadd.f32 %v524_v46, %v495_v0  ;;  %v670_v10 = vmul.f32 %v1936_v17, %v2671_v62 }
 0x113   : > { %v754_v56 = vadd.f32 %v726_v50, %v697_v36  ;;  %v468_v32 = vmul.f32 %v1927_v13, %v2661_v21  ;;  %v956_v57 = vadd.f32 %v928_v15, %v899_v58  ;;  %v1098_v1 = vmul.f32 %v2050_v3, %v1069_v42  ;;  %v2763_v15 = vld [vmem:[%s1883_s28 + $0xd9] sm:$0x3f] }
 0x114   : > { %1153 = vst [vmem:[%s2163_s30 + $0x98] sm:$0x3f] %v1125_v5  ;;  %v439_v8 = vadd.f32 %v411_v41, %v2007_v45  ;;  %v525_v7 = vmul.f32 %v1963_v27, %v2727_v49  ;;  %v929_v16 = vmul.f32 %v1991_v40, %v2734_v30  ;;  %v641_v54 = vadd.f32 %v613_v38, %v552_v48  ;;  %v2768_v42 = vld [vmem:[%s1883_s28 + $0xd2] sm:$0xff] }
 0x115   : > { %v843_v35 = vadd.f32 %v815_v53, %v754_v56  ;;  %v727_v12 = vmul.f32 %v1976_v33, %v2737_v18  ;;  %v1041_v19 = vadd.f32 %v1013_v52, %v956_v57  ;;  %v1014_v20 = vmul.f32 %v2018_v51, %v985_v25  ;;  %v383_v52 = vld [vmem:[%s1883_s28 + $0xe0] sm:$0xff]  ;;  %v1071_v41 = vld [vmem:[%s1901_s3 + $0xb0] sm:$0xff] }
 0x116   : > { %v496_v9 = vadd.f32 %v468_v32, %v439_v8  ;;  %v614_v31 = vmul.f32 %v1914_v6, %v2631_v29  ;;  %v698_v26 = vadd.f32 %v670_v10, %v641_v54  ;;  %v816_v55 = vmul.f32 %v1922_v11, %v2638_v63  ;;  %v384_v54 = vld [vmem:[%s1883_s28 + $0xe8] sm:$0x3f] }
 0x117   : > { %v900_v4 = vadd.f32 %v872_v47, %v843_v35  ;;  %v671_v34 = vmul.f32 %v1936_v17, %v2697_v59  ;;  %v1126_v14 = vadd.f32 %v1098_v1, %v1041_v19  ;;  %v412_v61 = vmul.f32 %v1907_v2, %v2634_v60  ;;  %v987_v35 = vld [vmem:[%s1894_s0 + $0xb8] sm:$0x3f] }
 0x118   : > { %v553_v50 = vadd.f32 %v525_v7, %v496_v9  ;;  %v469_v46 = vmul.f32 %v1927_v13, %v2700_v43  ;;  %v1099_v44 = vmul.f32 %v2050_v3, %v1070_v37  ;;  %v755_v39 = vadd.f32 %v727_v12, %v698_v26  ;;  %v586_v37 = vld [vmem:[%s1883_s28 + $0xe1] sm:$0xff] }
 0x119   : > { %v957_v29 = vadd.f32 %v929_v16, %v900_v4  ;;  %v873_v63 = vmul.f32 %v1953_v23, %v2704_v22  ;;  %1154 = vst [vmem:[%s2163_s30 + $0xa0] sm:$0xff] %v1126_v14  ;;  %v728_v60 = vmul.f32 %v1976_v33, %v2763_v15  ;;  %v440_v53 = vadd.f32 %v412_v61, %v2007_v45 }
 0x11a   : > { %v642_v36 = vadd.f32 %v614_v31, %v553_v50  ;;  %v526_v0 = vmul.f32 %v1963_v27, %v383_v52  ;;  %v844_v5 = vadd.f32 %v816_v55, %v755_v39  ;;  %v930_v58 = vmul.f32 %v1991_v40, %v2768_v42 }
 0x11b   : > { %v1042_v38 = vadd.f32 %v1014_v20, %v957_v29  ;;  %v1015_v47 = vmul.f32 %v2018_v51, %v986_v24  ;;  %v817_v25 = vmul.f32 %v1922_v11, %v2668_v28  ;;  %v497_v48 = vadd.f32 %v469_v46, %v440_v53  ;;  %v2795_v20 = vld [vmem:[%s1883_s28 + $0xda] sm:$0x3f] }
 0x11c   : > { %v699_v56 = vadd.f32 %v671_v34, %v642_v36  ;;  %v615_v10 = vmul.f32 %v1914_v6, %v2671_v62  ;;  %v901_v57 = vadd.f32 %v873_v63, %v844_v5  ;;  %v874_v1 = vmul.f32 %v1953_v23, %v2734_v30  ;;  %v1072_v24 = vld [vmem:[%s1901_s3 + $0xb8] sm:$0x3f]  ;;  %v385_v63 = vld [vmem:[%s1883_s28 + $0xf0] sm:$0xff] }
 0x11d   : > { %v1127_v32 = vadd.f32 %v1099_v44, %v1042_v38  ;;  %v413_v8 = vmul.f32 %v1907_v2, %v2661_v21  ;;  %v554_v16 = vadd.f32 %v526_v0, %v497_v48  ;;  %v672_v28 = vmul.f32 %v1936_v17, %v2737_v18 }
 0x11e   : > { %v756_v7 = vadd.f32 %v728_v60, %v699_v56  ;;  %v470_v12 = vmul.f32 %v1927_v13, %v2727_v49  ;;  %v958_v62 = vadd.f32 %v930_v58, %v901_v57  ;;  %v1100_v19 = vmul.f32 %v2050_v3, %v1071_v41  ;;  %v988_v60 = vld [vmem:[%s1894_s0 + $0xc0] sm:$0xff] }
 0x11f   : > { %1155 = vst [vmem:[%s2163_s30 + $0xa8] sm:$0x3f] %v1127_v32  ;;  %v441_v21 = vadd.f32 %v413_v8, %v2007_v45  ;;  %v527_v9 = vmul.f32 %v1963_v27, %v384_v54  ;;  %v931_v4 = vmul.f32 %v1991_v40, %v2795_v20  ;;  %v643_v26 = vadd.f32 %v615_v10, %v554_v16  ;;  %v789_v41 = vld [vmem:[%s1883_s28 + $0xe2] sm:$0xff] }
 0x120   : > { %v845_v31 = vadd.f32 %v817_v25, %v756_v7  ;;  %v729_v55 = vmul.f32 %v1976_v33, %v586_v37  ;;  %v1043_v34 = vadd.f32 %v1015_v47, %v958_v62  ;;  %v1016_v14 = vmul.f32 %v2018_v51, %v987_v35  ;;  %v587_v47 = vld [vmem:[%s1883_s28 + $0xe9] sm:$0x3f] }
 0x121   : > { %v498_v50 = vadd.f32 %v470_v12, %v441_v21  ;;  %v616_v61 = vmul.f32 %v1914_v6, %v2697_v59  ;;  %v700_v29 = vadd.f32 %v672_v28, %v643_v26  ;;  %v818_v44 = vmul.f32 %v1922_v11, %v2704_v22  ;;  %v386_v28 = vld [vmem:[%s1883_s28 + $0xf8] sm:$0x3f] }
 0x122   : > { %v902_v46 = vadd.f32 %v874_v1, %v845_v31  ;;  %v673_v39 = vmul.f32 %v1936_v17, %v2763_v15  ;;  %v1128_v36 = vadd.f32 %v1100_v19, %v1043_v34  ;;  %v414_v0 = vmul.f32 %v1907_v2, %v2700_v43  ;;  %v1073_v1 = vld [vmem:[%s1901_s3 + $0xc0] sm:$0xff]  ;;  %v588_v21 = vld [vmem:[%s1883_s28 + $0xf1] sm:$0xff]  ;;  %v790_v34 = vld [vmem:[%s1883_s28 + $0xea] sm:$0x3f] }
 0x123   : > { %v555_v53 = vadd.f32 %v527_v9, %v498_v50  ;;  %v471_v38 = vmul.f32 %v1927_v13, %v383_v52  ;;  %v1101_v5 = vmul.f32 %v2050_v3, %v1072_v24  ;;  %v757_v58 = vadd.f32 %v729_v55, %v700_v29 }
 0x124   : > { %v959_v59 = vadd.f32 %v931_v4, %v902_v46  ;;  %v875_v22 = vmul.f32 %v1953_v23, %v2768_v42  ;;  %1156 = vst [vmem:[%s2163_s30 + $0xb0] sm:$0xff] %v1128_v36  ;;  %v730_v25 = vmul.f32 %v1976_v33, %v587_v47  ;;  %v442_v43 = vadd.f32 %v414_v0, %v2007_v45 }
 0x125   : > { %v644_v56 = vadd.f32 %v616_v61, %v555_v53  ;;  %v528_v52 = vmul.f32 %v1963_v27, %v385_v63  ;;  %v846_v10 = vadd.f32 %v818_v44, %v757_v58  ;;  %v932_v32 = vmul.f32 %v1991_v40, %v789_v41  ;;  %v589_v63 = vld [vmem:[%s1883_s28 + $0xf9] sm:$0x3f] }
 0x126   : > { %v1044_v48 = vadd.f32 %v1016_v14, %v959_v59  ;;  %v1017_v57 = vmul.f32 %v2018_v51, %v988_v60  ;;  %v819_v7 = vmul.f32 %v1922_v11, %v2734_v30  ;;  %v499_v35 = vadd.f32 %v471_v38, %v442_v43  ;;  %v989_v14 = vld [vmem:[%s1894_s0 + $0xc8] sm:$0x3f]  ;;  %v791_v60 = vld [vmem:[%s1883_s28 + $0xf2] sm:$0xff] }
 0x127   : > { %v701_v8 = vadd.f32 %v673_v39, %v644_v56  ;;  %v617_v16 = vmul.f32 %v1914_v6, %v2737_v18  ;;  %v903_v62 = vadd.f32 %v875_v22, %v846_v10  ;;  %v876_v19 = vmul.f32 %v1953_v23, %v2795_v20  ;;  %v1075_v43 = vld [vmem:[%s1901_s3 + $0xd0] sm:$0xff]  ;;  %v792_v10 = vld [vmem:[%s1883_s28 + $0xfa] sm:$0x3f] }
 0x128   : > { %v1129_v12 = vadd.f32 %v1101_v5, %v1044_v48  ;;  %v415_v9 = vmul.f32 %v1907_v2, %v2727_v49  ;;  %v556_v4 = vadd.f32 %v528_v52, %v499_v35  ;;  %v674_v30 = vmul.f32 %v1936_v17, %v586_v37  ;;  %v1076_v35 = vld [vmem:[%s1901_s3 + $0xd8] sm:$0x3f] }
 0x129   : > { %v758_v31 = vadd.f32 %v730_v25, %v701_v8  ;;  %v472_v26 = vmul.f32 %v1927_v13, %v384_v54  ;;  %v960_v55 = vadd.f32 %v932_v32, %v903_v62  ;;  %v1102_v18 = vmul.f32 %v2050_v3, %v1073_v1  ;;  %v1074_v13 = vld [vmem:[%s1901_s3 + $0xc8] sm:$0x3f]  ;;  %v991_v8 = vld [vmem:[%s1894_s0 + $0xd8] sm:$0x3f] }
 0x12a   : > { %1157 = vst [vmem:[%s2163_s30 + $0xb8] sm:$0x3f] %v1129_v12  ;;  %v443_v24 = vadd.f32 %v415_v9, %v2007_v45  ;;  %v529_v50 = vmul.f32 %v1963_v27, %v386_v28  ;;  %v933_v49 = vmul.f32 %v1991_v40, %v790_v34  ;;  %v645_v61 = vadd.f32 %v617_v16, %v556_v4 }
 0x12b   : > { %v847_v2 = vadd.f32 %v819_v7, %v758_v31  ;;  %v731_v37 = vmul.f32 %v1976_v33, %v588_v21  ;;  %v1045_v46 = vadd.f32 %v1017_v57, %v960_v55  ;;  %v618_v29 = vmul.f32 %v1914_v6, %v2763_v15  ;;  %v990_v15 = vld [vmem:[%s1894_s0 + $0xd0] sm:$0xff]  ;;  %s1623_s0 = smov [#allocation12]  }
 0x12c   : > { %v500_v54 = vadd.f32 %v472_v26, %v443_v24  ;;  %v1018_v45 = vmul.f32 %v2018_v51, %v989_v14  ;;  %v702_v39 = vadd.f32 %v674_v30, %v645_v61  ;;  %v820_v27 = vmul.f32 %v1922_v11, %v2768_v42  ;;  %s1541_s3 = sshll.u32 %s1623_s0, 4  ;;  %s1542_s3 = int_to_ptr.vmem [resolvable:$false] %s1541_s3 }
 0x12d   : > { %v904_v44 = vadd.f32 %v876_v19, %v847_v2  ;;  %v1130_v36 = vadd.f32 %v1102_v18, %v1045_v46  ;;  %v675_v0 = vmul.f32 %v1936_v17, %v587_v47  ;;  %v1103_v59 = vmul.f32 %v2050_v3, %v1074_v13  ;;  %s1543_s16 = scalar_lea.vmem %s1542_s3, 7168  ;;  %p1544_p3 = scmp.lt.s32.totalorder %s2884_s25, %s1542_s3 }
 0x12e   : > { %v557_v53 = vadd.f32 %v529_v50, %v500_v54  ;;  %v759_v5 = vadd.f32 %v731_v37, %v702_v39  ;;  %v877_v6 = vmul.f32 %v1953_v23, %v789_v41  ;;  %v732_v42 = vmul.f32 %v1976_v33, %v589_v63  ;;  %p1545_p11 = scmp.lt.s32.totalorder %s1543_s16, %s1537_s9 }
 0x12f   : > { %v961_v38 = vadd.f32 %v933_v49, %v904_v44  ;;  %1158 = vst [vmem:[%s2163_s30 + $0xc0] sm:$0xff] %v1130_v36  ;;  %v934_v25 = vmul.f32 %v1991_v40, %v791_v60  ;;  %v821_v47 = vmul.f32 %v1922_v11, %v2795_v20  ;;  %v1019_v41 = vmul.f32 %v2018_v51, %v990_v15 }
 0x130   : > { %v646_v58 = vadd.f32 %v618_v29, %v557_v53  ;;  %v848_v56 = vadd.f32 %v820_v27, %v759_v5  ;;  %v878_v33 = vmul.f32 %v1953_v23, %v790_v34  ;;  %v1104_v1 = vmul.f32 %v2050_v3, %v1075_v43  ;;  %p1546_p13 = por %p1545_p11, %p1544_p3 }
 0x131   : > { %v1046_v22 = vadd.f32 %v1018_v45, %v961_v38  ;;  %v935_v11 = vmul.f32 %v1991_v40, %v792_v10  ;;  %v1020_v28 = vmul.f32 %v2018_v51, %v991_v8  ;;  %v1105_v62 = vmul.f32 %v2050_v3, %v1076_v35 }
 0x132   : > { %v703_v17 = vadd.f32 %v675_v0, %v646_v58  ;;  %v905_v48 = vadd.f32 %v877_v6, %v848_v56  ;;  %p1547_p10 = pnand %p1546_p13, %p1540_p8 }
 0x133   : > { %v1131_v52 = vadd.f32 %v1103_v59, %v1046_v22 }
 0x134   : > { %v760_v32 = vadd.f32 %v732_v42, %v703_v17  ;;  %v962_v57 = vadd.f32 %v934_v25, %v905_v48 }
 0x135   : > { %1159 = vst [vmem:[%s2163_s30 + $0xc8] sm:$0x3f] %v1131_v52 }
 0x136   : > { %v849_v7 = vadd.f32 %v821_v47, %v760_v32  ;;  %v1047_v20 = vadd.f32 %v1019_v41, %v962_v57 }
 0x138   : > { %v906_v16 = vadd.f32 %v878_v33, %v849_v7  ;;  %v1132_v12 = vadd.f32 %v1104_v1, %v1047_v20 }
 0x13a   : > { %v963_v23 = vadd.f32 %v935_v11, %v906_v16  ;;  %1160 = vst [vmem:[%s2163_s30 + $0xd0] sm:$0xff] %v1132_v12 }
 0x13c   : > { %v1048_v19 = vadd.f32 %v1020_v28, %v963_v23 }
 0x13e   : > { %v1133_v40 = vadd.f32 %v1105_v62, %v1048_v19 }
 0x140   : > { %1161 = vst [vmem:[%s2163_s30 + $0xd8] sm:$0x3f] %v1133_v40 }
 0x141   : > { %1550 = shalt.err (!%p1547_p10)
}
 0x142   : > { %s1551_s7 = scalar_lea.hbm %s2882_s15, 3584  ;;  %s1555_s10 = scalar_lea.hbm %s2933_s5, 7168 }
 0x143   : > { %p1552_p9 = scmp.ne.s32.totalorder %s2882_s15, %s1551_s7  ;;  %p1556_p5 = scmp.lt.s32.totalorder %s2882_s15, %s2933_s5 }
 0x144   : > { %p1557_p1 = scmp.lt.s32.totalorder %s1555_s10, %s1551_s7 }
 0x145   : > { %p1553_p12 = pnand %p1552_p9, %p2977_p7 }
 0x146   : > { %p1558_p6 = por %p1557_p1, %p1556_p5 }
 0x147   : > { %p1554_p0 = pneg %p1553_p12 }
 0x149   : > { %p1559_p4 = pnand %p1558_p6, %p1554_p0 }
 0x14b   : > { %1562 = shalt.err (!%p1559_p4)
}
 0x14c   : > { %s1624_s11 = smov 128   ;;  %s1625_s1 = smov 256  }
 0x14d   : > { %s1626_s26 = smov 8  }
 0x14e   : > { %1358 = dma.vmem_to_hbm [thread:$0]  (%p2977_p7), %s2884_s25, 3584, %s2882_s15, %s1163_s8, %s1624_s11, %s1625_s1, %s1626_s26  }
 0x14f PF: > { %s1190_s27 = sand.u32 1, %s1601_s18   ;;  %p2978_p2 = scmp.ne.s32.totalorder %s2961_s29, 0 }
 0x150   : > { %p2979_p8 = scmp.ge.s32.totalorder %s1613_s21, 2  ;;  %s1191_s12 = scalar_lea.sflag [#allocation4], %s1190_s27 }
 0x152   : > { %p1378_p3 = pnand %p2979_p8, %p2978_p2 }
 0x154   : > { %p1379_p11 = pneg %p1378_p3 }
 0x156   : > { %1596 = dma.done.wait (%p1379_p11), %s1191_s12, 3584  }
 0x157   : > { %1598 = vsyncadd (%p1379_p11), %s1191_s12, 4294963712  ;;  %s2980_s30 = sld [smem:[#allocation18_spill]]  ;;  %p23_p13 = scmp.ge.s32.totalorder %s1678_s22, 4  }
 0x158   : > { %s2981_s20 = sld [smem:[#allocation19_spill]]  ;;  %s2982_s18 = smov %s1605_s19 }
 0x159   : > { %s2984_s21 = smov %s1678_s22  ;;  %25 = sbr.rel (!%p23_p13) target bundleno = 14 (0xe), region = 119 }
 0x15d   : > { %s2983_s19 = smov %s2980_s30 }
 0x15e   :  { %1196 = vsyncpa [#allocation3], 1 }
 0x15f   :  { %1198 = vsyncpa [#allocation3 + $0x1], 1 }
 0x160   :  { %1199 = vsyncpa [#allocation10], 1 }
 0x161   :  { %1201 = vsyncpa [#allocation10 + $0x1], 1 }
 0x162   :  { %1202 = vsyncpa [#allocation4], 1 }
 0x163   :  { %1204 = vsyncpa [#allocation4 + $0x1], 1 }
 0x164   :  { %1205 = vsyncpa [#allocation5], 1 }
 0x165   :  { %1207 = vsyncpa [#allocation5 + $0x1], 1 }
 0x166   :  { %1208 = vsyncpa [#allocation6], 1 }
 0x167   :  { %1210 = vsyncpa [#allocation6 + $0x1], 1 }

</bundles_post_ra>
